<compile_context>
chip_gen: v5e
topology: v5e:2x2
jax: 0.10.0
libtpu: 0.0.40
codegen_flags: <defaults>
</compile_context>

<pallas_src>
import functools

import jax
import jax.numpy as jnp
from jax.experimental import pallas as pl
from jax.experimental.pallas import tpu as pltpu


def _round_up(x, m):
    return (x + m - 1) // m * m


def _pad_lane_dim(n):
    # 256-aligned tiles fill the 2x256x256 MXU on v6e/v7x; 128 is optimal on v5e and
    # for small dims (avoids inflating HBM/VMEM for tiny feature widths).
    return _round_up(n, 256) if n >= 256 else _round_up(n, 128)


def _vmem_bytes_estimate(ppr, npr, cinp, cfp, ncp):
    """Rough VMEM footprint (lane-padded layouts, double-buffered image block)."""
    lane = 128
    x_block = ppr * max(cinp, lane) * 2 * 2          # bf16 image block, 2 buffers
    w9 = 9 * max(cinp, 8) * cfp * 2                  # conv weight (bf16)
    wcls = cfp * ncp * 4                             # classifier weight (f32)
    biases = 2 * 8 * max(cfp, ncp) * 4
    mask = npr * lane * 4                            # (NPr, 1) mask, lane-padded
    h_live = 3 * npr * cfp * 4                       # conv acc + relu/masked temps
    outs = 2 * 2 * 8 * max(cfp, ncp) * 4
    return x_block + w9 + wcls + biases + mask + h_live + outs


def _fused_conv_pool_cls_kernel(x_ref, w9_ref, bconv_ref, mask_ref, wcls_ref,
                                bcls_ref, feat_ref, logits_ref,
                                *, wp, n_eval, inv_hw):
    """Per batch element: fused im2col conv3x3 + bias + ReLU + global-avg-pool + Linear.

    x_ref holds one spatially-padded NHWC image flattened over (h, w): (1, Ppr, Cin8).
    For flat position p, the 3x3 tap (dy, dx) lives at flat row p + (dy-1)*Wp + (dx-1),
    so the conv is 9 shifted contiguous row-slices matmul'd against (Cin8, Cfp) weight
    slices (f32 accumulation on the MXU).  Wrapped border positions are masked out
    before pooling.
    """
    xv = x_ref[0]                                            # (Ppr, Cin8) bf16
    acc = None
    for dy in range(3):
        for dx in range(3):
            start = dy * wp + dx                             # static slice offset
            xs = xv[start:start + n_eval, :]                 # (NPr, Cin8)
            part = jnp.dot(xs, w9_ref[dy * 3 + dx],
                           preferred_element_type=jnp.float32)
            acc = part if acc is None else acc + part        # (NPr, Cfp) f32
    h = jnp.maximum(acc + bconv_ref[...], 0.0)               # bias + ReLU, f32
    # Mask off padded-border/garbage rows; pool reduction runs once per image.
    pooled = jnp.sum(h * mask_ref[...], axis=0, keepdims=True) * inv_hw   # (1, Cfp)
    feat_ref[0] = pooled
    # Fused classifier: padded (Cfp, NCp) weight stays resident in VMEM (f32 matmul).
    logits_ref[0] = (jnp.dot(pooled, wcls_ref[...],
                             preferred_element_type=jnp.float32) + bcls_ref[...])


def basic_ce_forward(x_nchw, wconv, bconv, wcls, bcls):
    """x_nchw: [B, Cin, H, W] float32. Returns dict(feature_map, logits)."""
    B, Cin, H, W = x_nchw.shape
    Cf = wconv.shape[1]              # backbone feature_dim
    NC = wcls.shape[1]               # n_classes
    HW = H * W
    Hp, Wp = H + 2, W + 2            # 1-pixel zero spatial pad (conv pad=1)
    P = Hp * Wp                      # flattened padded spatial positions
    NP = P - 2 * (Wp + 1)            # evaluated positions (all interior + masked edge)
    NPr = _round_up(NP, 8)           # sublane-aligned evaluation count
    Ppr = _round_up(NPr + 2 * (Wp + 1), 8)   # flat rows needed (shifts stay in-bounds)
    Cin8 = _round_up(Cin, 8)         # sublane-aligned contraction dim
    Cfp = _pad_lane_dim(Cf)
    NCp = _pad_lane_dim(NC)

    # --- glue (raw-image sized only; no 9x-expanded tensor, no inflated transpose) ---
    x_nhwc = jnp.transpose(x_nchw, (0, 2, 3, 1))                     # (B, H, W, Cin)
    x_pad = jnp.pad(x_nhwc, ((0, 0), (1, 1), (1, 1), (0, Cin8 - Cin)))
    x_flat = x_pad.reshape(B, P, Cin8)
    x_flat = jnp.pad(x_flat, ((0, 0), (0, Ppr - P), (0, 0))).astype(jnp.bfloat16)

    # conv weight (Cin*9, Cf), row k = c*9 + (dy*3+dx)  ->  (9, Cin8, Cfp) bf16
    w9 = wconv.reshape(Cin, 9, Cf).transpose(1, 0, 2)
    w9 = jnp.pad(w9, ((0, 0), (0, Cin8 - Cin), (0, Cfp - Cf))).astype(jnp.bfloat16)
    bconv_p = jnp.pad(bconv, ((0, Cfp - Cf),)).reshape(1, Cfp).astype(jnp.float32)

    # interior mask over evaluated flat positions p = (Wp+1) .. (Wp+1)+NPr-1
    p_idx = jnp.arange(NPr) + (Wp + 1)
    hp_ = p_idx // Wp
    wp_ = p_idx % Wp
    mask = ((p_idx < P) & (hp_ >= 1) & (hp_ <= H) & (wp_ >= 1) & (wp_ <= W))
    mask = mask.astype(jnp.float32).reshape(NPr, 1)

    # classifier kept f32 for accuracy (tiny matmul, weight resident in VMEM)
    wcls_p = jnp.pad(wcls, ((0, Cfp - Cf), (0, NCp - NC))).astype(jnp.float32)
    bcls_p = jnp.pad(bcls, ((0, NCp - NC),)).reshape(1, NCp).astype(jnp.float32)

    vmem_limit = int(min(max(4 * _vmem_bytes_estimate(Ppr, NPr, Cin8, Cfp, NCp),
                             16 * 2 ** 20), 48 * 2 ** 20))
    cost = pl.CostEstimate(
        flops=int(2 * B * (9 * NPr * Cin8 * Cfp + Cfp * NCp)),
        transcendentals=0,
        bytes_accessed=int(B * Ppr * Cin8 * 2 + 9 * Cin8 * Cfp * 2 + Cfp * NCp * 4
                           + (Cfp + NCp) * 4 + NPr * 4 + B * (Cfp + NCp) * 4))

    feat3, logits3 = pl.pallas_call(
        functools.partial(_fused_conv_pool_cls_kernel,
                          wp=Wp, n_eval=NPr, inv_hw=1.0 / HW),
        out_shape=(jax.ShapeDtypeStruct((B, 1, Cfp), jnp.float32),
                   jax.ShapeDtypeStruct((B, 1, NCp), jnp.float32)),
        grid=(B,),
        in_specs=[
            pl.BlockSpec((1, Ppr, Cin8), lambda b: (b, 0, 0)),   # image (streamed)
            pl.BlockSpec((9, Cin8, Cfp), lambda b: (0, 0, 0)),   # conv weight (resident)
            pl.BlockSpec((1, Cfp), lambda b: (0, 0)),            # conv bias
            pl.BlockSpec((NPr, 1), lambda b: (0, 0)),            # interior mask
            pl.BlockSpec((Cfp, NCp), lambda b: (0, 0)),          # classifier weight
            pl.BlockSpec((1, NCp), lambda b: (0, 0)),            # classifier bias
        ],
        out_specs=(pl.BlockSpec((1, 1, Cfp), lambda b: (b, 0, 0)),
                   pl.BlockSpec((1, 1, NCp), lambda b: (b, 0, 0))),
        compiler_params=pltpu.CompilerParams(
            dimension_semantics=("parallel",),         # batch -> megacore on v7x
            vmem_limit_bytes=vmem_limit),
        cost_estimate=cost,
    )(x_flat, w9, bconv_p, mask, wcls_p, bcls_p)

    feature_map = feat3.reshape(B, Cfp)[:, :Cf]        # strip lane padding
    logits = logits3.reshape(B, NCp)[:, :NC]
    return {"feature_map": feature_map, "logits": logits}


def _reference(x_nchw, wconv, bconv, wcls, bcls):
    B, Cin, H, W = x_nchw.shape
    K = Cin * 9
    xp = jnp.pad(x_nchw, ((0, 0), (0, 0), (1, 1), (1, 1)))
    cols = []
    for dy in range(3):
        for dx in range(3):
            cols.append(xp[:, :, dy:dy + H, dx:dx + W])
    patches = jnp.stack(cols, axis=2).transpose(0, 3, 4, 1, 2).reshape(B, H * W, K)
    h = jnp.maximum(jnp.einsum("bpk,kc->bpc", patches, wconv) + bconv, 0.0)
    feat = jnp.mean(h, axis=1)
    logits = feat @ wcls + bcls
    return feat, logits


if __name__ == "__main__":
    B, Cin, H, W = 2, 4, 16, 16
    feature_dim, n_classes = 32, 10

    key = jax.random.PRNGKey(0)
    kx, k1, k2, k3, k4 = jax.random.split(key, 5)

    x = jax.random.normal(kx, (B, Cin, H, W), dtype=jnp.float32)
    # deterministic synthetic parameters (backbone conv + classifier Linear)
    wconv = jax.random.normal(k1, (Cin * 9, feature_dim), dtype=jnp.float32) * 0.05
    bconv = jax.random.normal(k2, (feature_dim,), dtype=jnp.float32) * 0.01
    wcls = jax.random.normal(k3, (feature_dim, n_classes), dtype=jnp.float32) * 0.1
    bcls = jax.random.normal(k4, (n_classes,), dtype=jnp.float32) * 0.01

    out = basic_ce_forward(x, wconv, bconv, wcls, bcls)
    jax.block_until_ready(out)

    ref_feat, ref_logits = _reference(x, wconv, bconv, wcls, bcls)
    # bf16 conv inputs (f32 accumulation) -> loosened tolerance vs f32 reference
    assert jnp.allclose(out["feature_map"], ref_feat, rtol=2e-2, atol=2e-2)
    assert jnp.allclose(out["logits"], ref_logits, rtol=2e-2, atol=2e-2)
    assert out["feature_map"].shape == (B, feature_dim)
    assert out["logits"].shape == (B, n_classes)

    print("KERNEL_OK")
</pallas_src>

<mosaic_0001>
module attributes {stable_mosaic.version = 11 : i64} {
  func.func @_fused_conv_pool_cls_kernel(%arg0: i32, %arg1: memref<1x328x8xbf16, #tpu.memory_space<vmem>>, %arg2: memref<9x8x128xbf16, #tpu.memory_space<vmem>>, %arg3: memref<1x128xf32, #tpu.memory_space<vmem>>, %arg4: memref<288x1xf32, #tpu.memory_space<vmem>>, %arg5: memref<128x128xf32, #tpu.memory_space<vmem>>, %arg6: memref<1x128xf32, #tpu.memory_space<vmem>>, %arg7: memref<1x1x128xf32, #tpu.memory_space<vmem>>, %arg8: memref<1x1x128xf32, #tpu.memory_space<vmem>>) attributes {dimension_semantics = [#tpu.dimension_semantics<parallel>], iteration_bounds = array<i64: 2>, scalar_prefetch = 0 : i64, scratch_operands = 0 : i64, tpu.core_type = #tpu.core_type<tc>, window_params = [{transform_indices = @transform_0, window_bounds = array<i64: 1, 328, 8>}, {pipeline_mode = #tpu.pipeline_mode<synchronous>, transform_indices = @transform_1, window_bounds = array<i64: 9, 8, 128>}, {pipeline_mode = #tpu.pipeline_mode<synchronous>, transform_indices = @transform_2, window_bounds = array<i64: 1, 128>}, {pipeline_mode = #tpu.pipeline_mode<synchronous>, transform_indices = @transform_3, window_bounds = array<i64: 288, 1>}, {pipeline_mode = #tpu.pipeline_mode<synchronous>, transform_indices = @transform_4, window_bounds = array<i64: 128, 128>}, {pipeline_mode = #tpu.pipeline_mode<synchronous>, transform_indices = @transform_5, window_bounds = array<i64: 1, 128>}, {transform_indices = @transform_6, window_bounds = array<i64: 1, 1, 128>}, {transform_indices = @transform_7, window_bounds = array<i64: 1, 1, 128>}]} {
    %c0 = arith.constant 0 : index
    %c0_0 = arith.constant 0 : index
    %c0_1 = arith.constant 0 : index
    %0 = vector.load %arg1[%c0, %c0_0, %c0_1] : memref<1x328x8xbf16, #tpu.memory_space<vmem>>, vector<1x328x8xbf16>
    %1 = vector.shape_cast %0 : vector<1x328x8xbf16> to vector<328x8xbf16>
    %2 = vector.extract_strided_slice %1 {offsets = [0, 0], sizes = [288, 8], strides = [1, 1]} : vector<328x8xbf16> to vector<288x8xbf16>
    %c0_2 = arith.constant 0 : index
    %c0_3 = arith.constant 0 : index
    %c0_4 = arith.constant 0 : index
    %3 = vector.load %arg2[%c0_2, %c0_3, %c0_4] : memref<9x8x128xbf16, #tpu.memory_space<vmem>>, vector<1x8x128xbf16>
    %4 = vector.shape_cast %3 : vector<1x8x128xbf16> to vector<8x128xbf16>
    %cst = arith.constant dense<0.000000e+00> : vector<288x128xf32>
    %5 = tpu.matmul %2, %4, %cst {dimension_numbers = #tpu.dot_dimension_numbers<[1], [0], [0], [1], [0, 0, 1, 1], [], []>} : vector<288x8xbf16>, vector<8x128xbf16>, vector<288x128xf32> -> vector<288x128xf32>
    %6 = vector.extract_strided_slice %1 {offsets = [1, 0], sizes = [288, 8], strides = [1, 1]} : vector<328x8xbf16> to vector<288x8xbf16>
    %c1 = arith.constant 1 : index
    %c0_5 = arith.constant 0 : index
    %c0_6 = arith.constant 0 : index
    %7 = vector.load %arg2[%c1, %c0_5, %c0_6] : memref<9x8x128xbf16, #tpu.memory_space<vmem>>, vector<1x8x128xbf16>
    %8 = vector.shape_cast %7 : vector<1x8x128xbf16> to vector<8x128xbf16>
    %cst_7 = arith.constant dense<0.000000e+00> : vector<288x128xf32>
    %9 = tpu.matmul %6, %8, %cst_7 {dimension_numbers = #tpu.dot_dimension_numbers<[1], [0], [0], [1], [0, 0, 1, 1], [], []>} : vector<288x8xbf16>, vector<8x128xbf16>, vector<288x128xf32> -> vector<288x128xf32>
    %10 = arith.addf %5, %9 : vector<288x128xf32>
    %11 = vector.extract_strided_slice %1 {offsets = [2, 0], sizes = [288, 8], strides = [1, 1]} : vector<328x8xbf16> to vector<288x8xbf16>
    %c2 = arith.constant 2 : index
    %c0_8 = arith.constant 0 : index
    %c0_9 = arith.constant 0 : index
    %12 = vector.load %arg2[%c2, %c0_8, %c0_9] : memref<9x8x128xbf16, #tpu.memory_space<vmem>>, vector<1x8x128xbf16>
    %13 = vector.shape_cast %12 : vector<1x8x128xbf16> to vector<8x128xbf16>
    %cst_10 = arith.constant dense<0.000000e+00> : vector<288x128xf32>
    %14 = tpu.matmul %11, %13, %cst_10 {dimension_numbers = #tpu.dot_dimension_numbers<[1], [0], [0], [1], [0, 0, 1, 1], [], []>} : vector<288x8xbf16>, vector<8x128xbf16>, vector<288x128xf32> -> vector<288x128xf32>
    %15 = arith.addf %10, %14 : vector<288x128xf32>
    %16 = vector.extract_strided_slice %1 {offsets = [18, 0], sizes = [288, 8], strides = [1, 1]} : vector<328x8xbf16> to vector<288x8xbf16>
    %c3 = arith.constant 3 : index
    %c0_11 = arith.constant 0 : index
    %c0_12 = arith.constant 0 : index
    %17 = vector.load %arg2[%c3, %c0_11, %c0_12] : memref<9x8x128xbf16, #tpu.memory_space<vmem>>, vector<1x8x128xbf16>
    %18 = vector.shape_cast %17 : vector<1x8x128xbf16> to vector<8x128xbf16>
    %cst_13 = arith.constant dense<0.000000e+00> : vector<288x128xf32>
    %19 = tpu.matmul %16, %18, %cst_13 {dimension_numbers = #tpu.dot_dimension_numbers<[1], [0], [0], [1], [0, 0, 1, 1], [], []>} : vector<288x8xbf16>, vector<8x128xbf16>, vector<288x128xf32> -> vector<288x128xf32>
    %20 = arith.addf %15, %19 : vector<288x128xf32>
    %21 = vector.extract_strided_slice %1 {offsets = [19, 0], sizes = [288, 8], strides = [1, 1]} : vector<328x8xbf16> to vector<288x8xbf16>
    %c4 = arith.constant 4 : index
    %c0_14 = arith.constant 0 : index
    %c0_15 = arith.constant 0 : index
    %22 = vector.load %arg2[%c4, %c0_14, %c0_15] : memref<9x8x128xbf16, #tpu.memory_space<vmem>>, vector<1x8x128xbf16>
    %23 = vector.shape_cast %22 : vector<1x8x128xbf16> to vector<8x128xbf16>
    %cst_16 = arith.constant dense<0.000000e+00> : vector<288x128xf32>
    %24 = tpu.matmul %21, %23, %cst_16 {dimension_numbers = #tpu.dot_dimension_numbers<[1], [0], [0], [1], [0, 0, 1, 1], [], []>} : vector<288x8xbf16>, vector<8x128xbf16>, vector<288x128xf32> -> vector<288x128xf32>
    %25 = arith.addf %20, %24 : vector<288x128xf32>
    %26 = vector.extract_strided_slice %1 {offsets = [20, 0], sizes = [288, 8], strides = [1, 1]} : vector<328x8xbf16> to vector<288x8xbf16>
    %c5 = arith.constant 5 : index
    %c0_17 = arith.constant 0 : index
    %c0_18 = arith.constant 0 : index
    %27 = vector.load %arg2[%c5, %c0_17, %c0_18] : memref<9x8x128xbf16, #tpu.memory_space<vmem>>, vector<1x8x128xbf16>
    %28 = vector.shape_cast %27 : vector<1x8x128xbf16> to vector<8x128xbf16>
    %cst_19 = arith.constant dense<0.000000e+00> : vector<288x128xf32>
    %29 = tpu.matmul %26, %28, %cst_19 {dimension_numbers = #tpu.dot_dimension_numbers<[1], [0], [0], [1], [0, 0, 1, 1], [], []>} : vector<288x8xbf16>, vector<8x128xbf16>, vector<288x128xf32> -> vector<288x128xf32>
    %30 = arith.addf %25, %29 : vector<288x128xf32>
    %31 = vector.extract_strided_slice %1 {offsets = [36, 0], sizes = [288, 8], strides = [1, 1]} : vector<328x8xbf16> to vector<288x8xbf16>
    %c6 = arith.constant 6 : index
    %c0_20 = arith.constant 0 : index
    %c0_21 = arith.constant 0 : index
    %32 = vector.load %arg2[%c6, %c0_20, %c0_21] : memref<9x8x128xbf16, #tpu.memory_space<vmem>>, vector<1x8x128xbf16>
    %33 = vector.shape_cast %32 : vector<1x8x128xbf16> to vector<8x128xbf16>
    %cst_22 = arith.constant dense<0.000000e+00> : vector<288x128xf32>
    %34 = tpu.matmul %31, %33, %cst_22 {dimension_numbers = #tpu.dot_dimension_numbers<[1], [0], [0], [1], [0, 0, 1, 1], [], []>} : vector<288x8xbf16>, vector<8x128xbf16>, vector<288x128xf32> -> vector<288x128xf32>
    %35 = arith.addf %30, %34 : vector<288x128xf32>
    %36 = vector.extract_strided_slice %1 {offsets = [37, 0], sizes = [288, 8], strides = [1, 1]} : vector<328x8xbf16> to vector<288x8xbf16>
    %c7 = arith.constant 7 : index
    %c0_23 = arith.constant 0 : index
    %c0_24 = arith.constant 0 : index
    %37 = vector.load %arg2[%c7, %c0_23, %c0_24] : memref<9x8x128xbf16, #tpu.memory_space<vmem>>, vector<1x8x128xbf16>
    %38 = vector.shape_cast %37 : vector<1x8x128xbf16> to vector<8x128xbf16>
    %cst_25 = arith.constant dense<0.000000e+00> : vector<288x128xf32>
    %39 = tpu.matmul %36, %38, %cst_25 {dimension_numbers = #tpu.dot_dimension_numbers<[1], [0], [0], [1], [0, 0, 1, 1], [], []>} : vector<288x8xbf16>, vector<8x128xbf16>, vector<288x128xf32> -> vector<288x128xf32>
    %40 = arith.addf %35, %39 : vector<288x128xf32>
    %41 = vector.extract_strided_slice %1 {offsets = [38, 0], sizes = [288, 8], strides = [1, 1]} : vector<328x8xbf16> to vector<288x8xbf16>
    %c8 = arith.constant 8 : index
    %c0_26 = arith.constant 0 : index
    %c0_27 = arith.constant 0 : index
    %42 = vector.load %arg2[%c8, %c0_26, %c0_27] : memref<9x8x128xbf16, #tpu.memory_space<vmem>>, vector<1x8x128xbf16>
    %43 = vector.shape_cast %42 : vector<1x8x128xbf16> to vector<8x128xbf16>
    %cst_28 = arith.constant dense<0.000000e+00> : vector<288x128xf32>
    %44 = tpu.matmul %41, %43, %cst_28 {dimension_numbers = #tpu.dot_dimension_numbers<[1], [0], [0], [1], [0, 0, 1, 1], [], []>} : vector<288x8xbf16>, vector<8x128xbf16>, vector<288x128xf32> -> vector<288x128xf32>
    %45 = arith.addf %40, %44 : vector<288x128xf32>
    %c0_29 = arith.constant 0 : index
    %c0_30 = arith.constant 0 : index
    %46 = vector.load %arg3[%c0_29, %c0_30] : memref<1x128xf32, #tpu.memory_space<vmem>>, vector<1x128xf32>
    %47 = vector.broadcast %46 : vector<1x128xf32> to vector<288x128xf32>
    %48 = arith.addf %45, %47 : vector<288x128xf32>
    %cst_31 = arith.constant 0.000000e+00 : f32
    %49 = vector.broadcast %cst_31 : f32 to vector<288x128xf32>
    %50 = arith.maximumf %48, %49 : vector<288x128xf32>
    %c0_32 = arith.constant 0 : index
    %c0_33 = arith.constant 0 : index
    %51 = vector.load %arg4[%c0_32, %c0_33] : memref<288x1xf32, #tpu.memory_space<vmem>>, vector<288x1xf32>
    %52 = vector.broadcast %51 : vector<288x1xf32> to vector<288x128xf32>
    %53 = arith.mulf %50, %52 : vector<288x128xf32>
    %cst_34 = arith.constant dense<0.000000e+00> : vector<128xf32>
    %54 = vector.multi_reduction <add>, %53, %cst_34 [0] : vector<288x128xf32> to vector<128xf32>
    %55 = vector.shape_cast %54 : vector<128xf32> to vector<1x128xf32>
    %cst_35 = arith.constant 3.906250e-03 : f32
    %56 = vector.broadcast %cst_35 : f32 to vector<1x128xf32>
    %57 = arith.mulf %55, %56 : vector<1x128xf32>
    %c0_36 = arith.constant 0 : index
    %c0_37 = arith.constant 0 : index
    %c0_38 = arith.constant 0 : index
    %58 = vector.load %arg7[%c0_36, %c0_37, %c0_38] : memref<1x1x128xf32, #tpu.memory_space<vmem>>, vector<1x1x128xf32>
    %59 = vector.shape_cast %58 : vector<1x1x128xf32> to vector<1x128xf32>
    %60 = vector.shape_cast %57 : vector<1x128xf32> to vector<1x1x128xf32>
    tpu.vector_store %arg7[%c0_36, %c0_37, %c0_38], %60 {strides = array<i32>} : memref<1x1x128xf32, #tpu.memory_space<vmem>>, vector<1x1x128xf32>,
    %c0_39 = arith.constant 0 : index
    %c0_40 = arith.constant 0 : index
    %61 = vector.load %arg5[%c0_39, %c0_40] : memref<128x128xf32, #tpu.memory_space<vmem>>, vector<128x128xf32>
    %cst_41 = arith.constant dense<0.000000e+00> : vector<1x128xf32>
    %62 = tpu.matmul %57, %61, %cst_41 {dimension_numbers = #tpu.dot_dimension_numbers<[1], [0], [0], [1], [0, 0, 1, 1], [], []>} : vector<1x128xf32>, vector<128x128xf32>, vector<1x128xf32> -> vector<1x128xf32>
    %c0_42 = arith.constant 0 : index
    %c0_43 = arith.constant 0 : index
    %63 = vector.load %arg6[%c0_42, %c0_43] : memref<1x128xf32, #tpu.memory_space<vmem>>, vector<1x128xf32>
    %64 = arith.addf %62, %63 : vector<1x128xf32>
    %c0_44 = arith.constant 0 : index
    %c0_45 = arith.constant 0 : index
    %c0_46 = arith.constant 0 : index
    %65 = vector.load %arg8[%c0_44, %c0_45, %c0_46] : memref<1x1x128xf32, #tpu.memory_space<vmem>>, vector<1x1x128xf32>
    %66 = vector.shape_cast %65 : vector<1x1x128xf32> to vector<1x128xf32>
    %67 = vector.shape_cast %64 : vector<1x128xf32> to vector<1x1x128xf32>
    tpu.vector_store %arg8[%c0_44, %c0_45, %c0_46], %67 {strides = array<i32>} : memref<1x1x128xf32, #tpu.memory_space<vmem>>, vector<1x1x128xf32>,
    return
  }
  func.func @transform_0(%arg0: i32) -> (i32, i32, i32) {
    %c0_i32 = arith.constant 0 : i32
    %c0_i32_0 = arith.constant 0 : i32
    %c0_i32_1 = arith.constant 0 : i32
    return %arg0, %c0_i32, %c0_i32_0 : i32, i32, i32
  }
  func.func @transform_1(%arg0: i32) -> (i32, i32, i32) {
    %c0_i32 = arith.constant 0 : i32
    %c0_i32_0 = arith.constant 0 : i32
    %c0_i32_1 = arith.constant 0 : i32
    %c0_i32_2 = arith.constant 0 : i32
    return %c0_i32, %c0_i32_0, %c0_i32_1 : i32, i32, i32
  }
  func.func @transform_2(%arg0: i32) -> (i32, i32) {
    %c0_i32 = arith.constant 0 : i32
    %c0_i32_0 = arith.constant 0 : i32
    %c0_i32_1 = arith.constant 0 : i32
    return %c0_i32, %c0_i32_0 : i32, i32
  }
  func.func @transform_3(%arg0: i32) -> (i32, i32) {
    %c0_i32 = arith.constant 0 : i32
    %c0_i32_0 = arith.constant 0 : i32
    %c0_i32_1 = arith.constant 0 : i32
    return %c0_i32, %c0_i32_0 : i32, i32
  }
  func.func @transform_4(%arg0: i32) -> (i32, i32) {
    %c0_i32 = arith.constant 0 : i32
    %c0_i32_0 = arith.constant 0 : i32
    %c0_i32_1 = arith.constant 0 : i32
    return %c0_i32, %c0_i32_0 : i32, i32
  }
  func.func @transform_5(%arg0: i32) -> (i32, i32) {
    %c0_i32 = arith.constant 0 : i32
    %c0_i32_0 = arith.constant 0 : i32
    %c0_i32_1 = arith.constant 0 : i32
    return %c0_i32, %c0_i32_0 : i32, i32
  }
  func.func @transform_6(%arg0: i32) -> (i32, i32, i32) {
    %c0_i32 = arith.constant 0 : i32
    %c0_i32_0 = arith.constant 0 : i32
    %c0_i32_1 = arith.constant 0 : i32
    return %arg0, %c0_i32, %c0_i32_0 : i32, i32, i32
  }
  func.func @transform_7(%arg0: i32) -> (i32, i32, i32) {
    %c0_i32 = arith.constant 0 : i32
    %c0_i32_0 = arith.constant 0 : i32
    %c0_i32_1 = arith.constant 0 : i32
    return %arg0, %c0_i32, %c0_i32_0 : i32, i32, i32
  }
}

</mosaic_0001>

<bundles_post_ra>
// kernel: tpu_custom_call.1
= control target key start
LH: loop header
LB: loop body
LE: loop exit
PB: predicated region body
PF: predicated region fallthrough
CT: control target
= control target key end

     0   :  { %13 = vsyncpa [#allocation3], 0  ;;  %s4847_s0 = inlined_call_operand.vmem [shape: bf16[2,328,8], index: 0, kind: input, shape index: {}]   ;;  %s4848_s1 = inlined_call_operand.vmem [shape: bf16[9,8,128], index: 1, kind: input, shape index: {}]   ;;  %s4849_s2 = inlined_call_operand.vmem [shape: f32[1,128], index: 2, kind: input, shape index: {}]   ;;  %s4850_s3 = inlined_call_operand.vmem [shape: f32[288,1], index: 3, kind: input, shape index: {}]   ;;  %s4851_s4 = inlined_call_operand.vmem [shape: f32[128,128], index: 4, kind: input, shape index: {}]   ;;  %s4852_s5 = inlined_call_operand.vmem [shape: f32[1,128], index: 5, kind: input, shape index: {}]   ;;  %s4853_s6 = inlined_call_operand.hbm [shape: f32[2,1,128], index: 6, kind: output, shape index: {0}]   ;;  %s4854_s7 = inlined_call_operand.hbm [shape: f32[2,1,128], index: 7, kind: output, shape index: {1}]  }
   0x1   :  { %15 = vsyncpa [#allocation3 + $0x1], 0 }
   0x2   :  { %16 = vsyncpa [#allocation5], 0 }
   0x3   :  { %18 = vsyncpa [#allocation5 + $0x1], 0  ;;  %s3444_s24 = smov 0   ;;  %s3446_s25 = smov 0  }
   0x4   :  { %s3448_s26 = smov 0   ;;  %s3450_s27 = smov 0  }
   0x5 LB: > { %s3465_s28 = sadd.s32 4294967295, %s3401_s27   ;;  %s2959_s29 = sadd.s32 4294967294, %s3401_s27   ;;  %s3401_s27 = sphi %s3450_s27, %s4989_s27   ;;  %s3397_s26 = sphi %s3448_s26, %s4988_s26   ;;  %s3393_s25 = sphi %s3446_s25, %s4987_s25   ;;  %s3389_s24 = sphi %s3444_s24, %s4986_s24  }
   0x6   : > { %s3469_s30 = sadd.s32 1, %s3401_s27   ;;  %s162_s8 = sadd.s32 1, %s3397_s26 }
   0x7   : > { %s159_s9 = ssub.s32 %s3401_s27, %s3469_s30  ;;  %p172_p0 = scmp.ne.s32.totalorder %s3397_s26, %s3393_s25 }
   0x8   : > { %p160_p1 = scmp.eq.s32.totalorder %s159_s9, 0  ;;  %p173_p2 = scmp.eq.s32.totalorder %s3465_s28, 1 }
   0x9   : > { %p178_p3 = scmp.ne.s32.totalorder %s3393_s25, %s3389_s24  ;;  %p179_p4 = scmp.eq.s32.totalorder %s2959_s29, 1 }
   0xa   : > { %s3480_s10 = scalar_select %p160_p1, %s3397_s26, %s162_s8  }
   0xb   : > { %p3482_p5 = por %p173_p2, %p172_p0  ;;  %p3486_p6 = por %p179_p4, %p178_p3 }
   0xc   : > { %p2962_p7 = scmp.ge.s32.totalorder %s3401_s27, 1  ;;  %p246_p8 = scmp.lt.s32.totalorder %s3401_s27, 3 }
   0xe   : > { %p247_p9 = pnand %p2962_p7, %p246_p8 }
  0x10   : > { %250 = sbr.rel (%p247_p9) target bundleno = 976 (0x3d0), region = 44 }
  0x15   : > { %v2964_v0 = vld [vmem:[%s4848_s1 + $0x4] sm:$0xf]  ;;  %vm628_vm0 = vcmask 1043456   ;;  %p281_p10 = scmp.lt.s32.totalorder %s3465_s28, 1  ;;  %v3073_v2 = vld [vmem:[%s4848_s1 + $0x8] sm:$0xf]  ;;  %s2859_s14 = scalar_lea.hbm %s4853_s6, %s3465_s28 }
  0x16   : > { %v630_v1 = vsel %vm628_vm0, %v2964_v0, 0  ;;  %v3092_v3 = vld [vmem:[%s4848_s1 + $0xc] sm:$0xf]  ;;  %v964_v4 = vsel %vm628_vm0, %v3073_v2, 0  ;;  %v3111_v6 = vld [vmem:[%s4848_s1 + $0x10] sm:$0xf] }
  0x17   : > { %3236 = vmatpush.bf16.msra.mxu1 %v630_v1  ;;  %3237 = vmatpush.bf16.msra.mxu2 %v630_v1  ;;  %s282_s19 = scalar_select %p281_p10, %s3465_s28, 1  ;;  %v1120_v5 = vsel %vm628_vm0, %v3092_v3, 0  ;;  %v1400_v7 = vsel %vm628_vm0, %v3111_v6, 0  ;;  %vm424_vm1 = vsmask.f32 7424  ;;  %vm573_vm2 = vcmask 64512  }
  0x18   : > { %3238 = vmatpush.bf16.msra.mxu3 %v630_v1  ;;  %639 = vmatpush.bf16.msra.mxu0 %v630_v1  ;;  %v328_v52 = vld [vmem:[%s4848_s1] sm:$0xf]  ;;  %vm871_vm3 = vcmask 1046528   ;;  %vm1259_vm4 = vsmask.f32 6400  ;;  %vm1539_vm5 = vcmask 1045504  }
  0x19   : > { %s3239_s22 = smul.u32 164, %s282_s19  ;;  %v768_v57 = vsel %vm628_vm0, %v328_v52, 0  ;;  %vm1927_vm6 = vsmask.f32 5376  ;;  %vm2207_vm7 = vcmask 1044480   ;;  %s4793_s29 = sand.u32 1, %s3393_s25  }
  0x1a   : > { %s274_s15 = scalar_lea.vmem [#allocation2], %s4793_s29  ;;  %s2863_s17 = sshll.u32 %s2859_s14, 4  ;;  %s2864_s17 = int_to_ptr.hbm [resolvable:$true] %s2863_s17 }
  0x1b   : > { %973 = vmatpush.bf16.msrb.mxu2 %v964_v4  ;;  %s3513_s8 = scalar_lea.vmem %s4847_s0, %s3239_s22  ;;  %777 = vmatpush.bf16.msrb.mxu1 %v768_v57  ;;  %s2861_s16 = sshll.u32 %s274_s15, 4  ;;  %s2862_s16 = int_to_ptr.vmem [resolvable:$true] %s2861_s16 }
  0x1c   : > { %1129 = vmatpush.bf16.msrb.mxu3 %v1120_v5  ;;  %1409 = vmatpush.bf16.msrb.mxu0 %v1400_v7  ;;  %v3516_v8 = vld [vmem:[%s3513_s8 + $0x28] sm:$0xff]  ;;  %v3519_v9 = vld [vmem:[%s3513_s8 + $0x30] sm:$0xff]  ;;  %v3522_v10 = vld [vmem:[%s3513_s8 + $0x40] sm:$0xff]  ;;  %s2847_s18 = scalar_lea.sflag [#allocation3], %s4793_s29  ;;  %s3321_s19 = sshra.s32 %s2864_s17, 4  ;;  %s3322_s19 = int_to_ptr.hbm [resolvable:$true] %s3321_s19 }
  0x1d   : > { %v3525_v11 = vld [vmem:[%s3513_s8 + $0x48] sm:$0xff]  ;;  %v3531_v13 = vld [vmem:[%s3513_s8 + $0x70] sm:$0xff]  ;;  %v3534_v14 = vshll.u32 %v3516_v8, 16  ;;  %v3537_v15 = vshrl.u32 %v3516_v8, 16  ;;  %v3540_v16 = vshll.u32 %v3519_v9, 16  ;;  %v3543_v17 = vshll.u32 %v3522_v10, 16  ;;  %p3328_p0 = scmp.lt.s32.totalorder %s3322_s19, %s4853_s6 }
  0x1e   : > { %v3528_v12 = vld [vmem:[%s3513_s8 + $0x68] sm:$0xff]  ;;  %v3546_v18 = vld [vmem:[%s3513_s8] sm:$0xff]  ;;  %v3552_v20 = vshrl.u32 %v3522_v10, 16  ;;  %v3555_v21 = vshll.u32 %v3525_v11, 16  ;;  %v3567_v27 = vshll.u32 %v3531_v13, 16  ;;  %v3593_v43 = vld [vmem:[%s3513_s8 + $0x38] sm:$0xff] }
  0x1f   : > { %4882 = vst [vmem:[#allocation8_spill] sm:$0xff] %v3534_v14  ;;  %v3549_v19 = vld [vmem:[%s3513_s8 + $0x8] sm:$0xff]  ;;  %v3558_v22 = vshll.u32 %v3528_v12, 16  ;;  %v3561_v23 = vshrl.u32 %v3528_v12, 16  ;;  %v467_v24 = vrot.slane %v3534_v14, 1  ;;  %v475_v25 = vrot.slane %v3540_v16, 1 }
  0x20   : > { %4883 = vst [vmem:[#allocation9_spill] sm:$0xff] %v3537_v15  ;;  %v491_v26 = vrot.slane %v3543_v17, 1  ;;  %v499_v28 = vrot.slane %v3555_v21, 1  ;;  %v426_v30 = vshrl.u32 %v3546_v18, 16  ;;  %v428_v31 = vshll.u32 %v3546_v18, 16  ;;  %v3596_v44 = vld [vmem:[%s3513_s8 + $0x50] sm:$0xff] }
  0x21   : > { %4884 = vst [vmem:[#allocation10_spill] sm:$0xff] %v3540_v16  ;;  %v531_v29 = vrot.slane %v3558_v22, 1  ;;  %v471_v32 = vor.u32 %v3537_v15, %v467_v24  ;;  %v539_v34 = vrot.slane %v3567_v27, 1  ;;  %v4855_v35 = vshll.u32 %v3549_v19, 16  ;;  %v3600_v46 = vld [vmem:[%s3513_s8 + $0x78] sm:$0xff]  ;;  %v3604_v47 = vld [vmem:[%s3513_s8 + $0x10] sm:$0xff] }
  0x22   : > { %4885 = vst [vmem:[#allocation11_spill] sm:$0xff] %v3543_v17  ;;  %v495_v33 = vor.u32 %v3552_v20, %v491_v26  ;;  %v430_v37 = vrot.slane %v428_v31, 1  ;;  %v3607_v48 = vshrl.u32 %v3519_v9, 16  ;;  %v3610_v49 = vshll.u32 %v3593_v43, 16  ;;  %v3639_v0 = vld [vmem:[%s3513_s8 + $0x60] sm:$0xff]  ;;  %s3323_s20 = scalar_lea.hbm %s3322_s19, 1 }
  0x23   : > { %4886 = vst [vmem:[#allocation12_spill] sm:$0xff] %v3552_v20  ;;  %v535_v36 = vor.u32 %v3561_v23, %v531_v29  ;;  %v476_v38 = vsel %vm424_vm1, %v471_v32, %v475_v25  ;;  %v435_v40 = vrot.slane %v4855_v35, 1  ;;  %v3613_v50 = vshrl.u32 %v3525_v11, 16  ;;  %v3666_v32 = vld [vmem:[%s3513_s8 + $0x18] sm:$0xff]  ;;  %p3324_p11 = scmp.ne.s32.totalorder %s3322_s19, %s3323_s20  ;;  %s3327_s22 = scalar_lea.hbm %s4853_s6, 2 }
  0x24   : > { %4887 = vst [vmem:[#allocation13_spill] sm:$0xff] %v3555_v21  ;;  %v500_v39 = vsel %vm424_vm1, %v495_v33, %v499_v28  ;;  %3042 = vmatmul.msk.bf16.vlgmr.msra.gmra.mxu1 %vm573_vm2, %v476_v38  ;;  %v431_v42 = vor.u32 %v430_v37, %v426_v30  ;;  %v3616_v51 = vshll.u32 %v3596_v44, 16  ;;  %v3622_v53 = vshrl.u32 %v3531_v13, 16  ;;  %p3329_p1 = scmp.lt.s32.totalorder %s3327_s22, %s3323_s20 }
  0x25   : > { %3045 = vmatmul.msk.bf16.vlgmr.msra.gmra.mxu2 %vm573_vm2, %v500_v39  ;;  %v540_v41 = vsel %vm424_vm1, %v535_v36, %v539_v34  ;;  %4888 = vst [vmem:[#allocation14_spill] sm:$0xff] %v3607_v48  ;;  %v3625_v54 = vshll.u32 %v3600_v46, 16  ;;  %v4856_v55 = vshrl.u32 %v3549_v19, 16  ;;  %v3629_v56 = vshll.u32 %v3604_v47, 16  ;;  %p3325_p12 = pnand %p3324_p11, %p3482_p5 }
  0x26   : > { %3050 = vmatmul.msk.bf16.vlgmr.msra.gmra.mxu3 %vm573_vm2, %v540_v41  ;;  %v436_v45 = vsel %vm424_vm1, %v431_v42, %v435_v40  ;;  %4889 = vst [vmem:[#allocation15_spill] sm:$0xff] %v3610_v49  ;;  %v479_v58 = vor.u32 %v3607_v48, %v475_v25  ;;  %v483_v59 = vrot.slane %v3610_v49, 1  ;;  %v503_v60 = vor.u32 %v3613_v50, %v499_v28  ;;  %v3655_v25 = vld [vmem:[%s3513_s8 + $0x58] sm:$0xff]  ;;  %v3658_v28 = vld [vmem:[%s3513_s8 + $0x80] sm:$0xff]  ;;  %p3330_p2 = por %p3329_p1, %p3328_p0 }
  0x27   : > { %3037 = vmatmul.msk.bf16.vlgmr.msra.gmra.mxu0 %vm573_vm2, %v436_v45  ;;  %4890 = vst [vmem:[#allocation16_spill] sm:$0xff] %v3613_v50  ;;  %v507_v61 = vrot.slane %v3616_v51, 1  ;;  %v543_v62 = vor.u32 %v3622_v53, %v539_v34  ;;  %v547_v63 = vrot.slane %v3625_v54, 1  ;;  %v439_v1 = vor.u32 %v4856_v55, %v435_v40  ;;  %v3685_v40 = vld [vmem:[%s3513_s8 + $0x20] sm:$0xff]  ;;  %p3326_p13 = pneg %p3325_p12 }
  0x28   : > { %4891 = vst [vmem:[#allocation17_spill] sm:$0xff] %v3616_v51  ;;  %v443_v2 = vrot.slane %v3629_v56, 1  ;;  %v484_v3 = vsel %vm424_vm1, %v479_v58, %v483_v59  ;;  %v3648_v6 = vshll.u32 %v3639_v0, 16  ;;  %v3663_v31 = vshrl.u32 %v3639_v0, 16 }
  0x29   : > { %4892 = vst [vmem:[#allocation18_spill] sm:$0xff] %v3629_v56  ;;  %v508_v4 = vsel %vm424_vm1, %v503_v60, %v507_v61  ;;  %v548_v5 = vsel %vm424_vm1, %v543_v62, %v547_v63  ;;  %v3669_v33 = vshrl.u32 %v3593_v43, 16  ;;  %v3672_v34 = vshrl.u32 %v3596_v44, 16  ;;  %p3331_p3 = pnand %p3330_p2, %p3326_p13 }
  0x2a   : > { %v444_v7 = vsel %vm424_vm1, %v439_v1, %v443_v2  ;;  %v523_v30 = vrot.slane %v3648_v6, 1  ;;  %v3675_v36 = vshll.u32 %v3655_v25, 16  ;;  %v3679_v38 = vshrl.u32 %v3600_v46, 16  ;;  %4895 = vst [vmem:[#allocation21_spill] sm:$0xff] %v3685_v40 }
  0x2b   : > { %4893 = vst [vmem:[#allocation19_spill] sm:$0xff] %v3669_v33  ;;  %v3682_v39 = vshll.u32 %v3658_v28, 16  ;;  %v3691_v42 = vshrl.u32 %v3604_v47, 16  ;;  %v3694_v45 = vshll.u32 %v3666_v32, 16  ;;  %v487_v52 = vor.u32 %v3669_v33, %v483_v59 }
  0x2c   : > { %4894 = vst [vmem:[#allocation20_spill] sm:$0xff] %v3672_v34  ;;  %v527_v37 = vor.u32 %v3663_v31, %v523_v30  ;;  %v511_v57 = vor.u32 %v3672_v34, %v507_v61  ;;  %v515_v58 = vrot.slane %v3675_v36, 1  ;;  %v551_v60 = vor.u32 %v3679_v38, %v547_v63 }
  0x2d   : > { %4896 = vst [vmem:[#allocation22_spill] sm:$0xff] %v3691_v42  ;;  %v555_v62 = vrot.slane %v3682_v39, 1  ;;  %v3702_v1 = vshll.u32 %v3685_v40, 16  ;;  %v492_v59 = vsel %vm424_vm1, %v487_v52, %v491_v26  ;;  %v3713_v63 = vshrl.u32 %v3685_v40, 16  ;;  %v3721_v26 = vld [vmem:[%s3513_s8 + $0x88] sm:$0xff] }
  0x2e   : > { %v532_v41 = vsel %vm424_vm1, %v527_v37, %v531_v29  ;;  %4897 = vst [vmem:[#allocation23_spill] sm:$0xff] %v3694_v45  ;;  %v447_v29 = vor.u32 %v3691_v42, %v443_v2  ;;  %v516_v61 = vsel %vm424_vm1, %v511_v57, %v515_v58  ;;  %v3728_v52 = vshrl.u32 %v3655_v25, 16 }
  0x2f   : > { %4898 = vst [vmem:[#allocation24_spill] sm:$0xff] %v3702_v1  ;;  %v3731_v57 = vshrl.u32 %v3658_v28, 16 }
  0x30   : > { %4899 = vst [vmem:[#allocation25_spill] sm:$0xff] %v3713_v63 }
  0x34   : > { %3043 = vmatmul.msk.bf16.gmra.mxu1 %vm573_vm2, %v484_v3  ;;  %v451_v3 = vrot.slane %v3694_v45, 1 }
  0x35   : > { %3046 = vmatmul.msk.bf16.gmra.mxu2 %vm573_vm2, %v508_v4  ;;  %v556_v4 = vsel %vm424_vm1, %v551_v60, %v555_v62  ;;  %v3734_v60 = vshll.u32 %v3721_v26, 16 }
  0x36   : > { %3051 = vmatmul.msk.bf16.gmra.mxu3 %vm573_vm2, %v548_v5  ;;  %v459_v5 = vrot.slane %v3702_v1, 1  ;;  %v452_v2 = vsel %vm424_vm1, %v447_v29, %v451_v3  ;;  %v3737_v29 = vshrl.u32 %v3666_v32, 16 }
  0x37   : > { %3038 = vmatmul.msk.bf16.gmra.mxu0 %vm573_vm2, %v444_v7 }
  0x38   : > { %v463_v7 = vor.u32 %v3713_v63, %v459_v5  ;;  %4900 = vst [vmem:[#allocation26_spill] sm:$0xff] %v3737_v29 }
  0x3a   : > { %v468_v37 = vsel %vm424_vm1, %v463_v7, %v467_v24  ;;  %v563_v24 = vrot.slane %v3734_v60, 1 }
  0x44   : > { %3044 = vmatmul.msk.bf16.gmra.mxu1 %vm573_vm2, %v492_v59  ;;  %v519_v59 = vor.u32 %v3728_v52, %v515_v58 }
  0x45   : > { %3047 = vmatmul.msk.bf16.gmra.mxu2 %vm573_vm2, %v516_v61  ;;  %v559_v61 = vor.u32 %v3731_v57, %v555_v62  ;;  %v3149_v62 = vld [vmem:[%s4848_s1 + $0x18] sm:$0xf] }
  0x46   : > { %3052 = vmatmul.msk.bf16.gmra.mxu3 %vm573_vm2, %v556_v4  ;;  %v3743_v4 = vld [vmem:[%s3513_s8 + $0x90] sm:$0xff]   ;;  %v524_v7 = vsel %vm424_vm1, %v519_v59, %v523_v30  ;;  %v1788_v30 = vsel %vm628_vm0, %v3149_v62, 0  ;;  %v3168_v59 = vld [vmem:[%s4848_s1 + $0x1c] sm:$0xf] }
  0x47   : > { %3039 = vmatmul.msk.bf16.gmra.mxu0 %vm573_vm2, %v452_v2  ;;  %4901 = vst [vmem:[#allocation27_spill] sm:$0xff] %v3743_v4  ;;  %v455_v2 = vor.u32 %v3737_v29, %v451_v3  ;;  %v564_v35 = vsel %vm424_vm1, %v559_v61, %v563_v24  ;;  %v3228_v55 = vunpack.c.l.b16 %v3743_v4  ;;  %1797 = vmatpush.bf16.msra.mxu2 %v1788_v30 }
  0x49   : > { %v460_v58 = vsel %vm424_vm1, %v455_v2, %v459_v5  ;;  %v3757_v3 = vpack.c.b16 %v3228_v55, %v3228_v55  ;;  %v3130_v5 = vld [vmem:[%s4848_s1 + $0x14] sm:$0xf]  ;;  %v2068_v55 = vsel %vm628_vm0, %v3168_v59, 0  ;;  %v4902_v59 = vshrl.u32 %v3549_v19, 16 }
  0x4a   : > { %v1632_v61 = vsel %vm628_vm0, %v3130_v5, 0  ;;  %2077 = vmatpush.bf16.msra.mxu3 %v2068_v55 }
  0x4b   : > { %1641 = vmatpush.bf16.msra.mxu1 %v1632_v61  ;;  %v1260_v5 = vrot.slane %v4902_v59, 1  ;;  %v1264_v61 = vrot.slane %v3629_v56, 2 }
  0x54   : > { %3055 = vmatmul.msk.bf16.vlgmr.msrb.gmra.mxu1 %vm573_vm2, %v3546_v18 }
  0x55   : > { %3048 = vmatmul.msk.bf16.gmra.mxu2 %vm573_vm2, %v524_v7  ;;  %v3774_v7 = vshrl.u32 %v3721_v26, 16 }
  0x56   : > { %3053 = vmatmul.msk.bf16.gmra.mxu3 %vm573_vm2, %v564_v35  ;;  %v3187_v35 = vld [vmem:[%s4848_s1 + $0x20] sm:$0xf] }
  0x57   : > { %3040 = vmatmul.msk.bf16.gmra.mxu0 %vm573_vm2, %v460_v58  ;;  %v2300_v2 = vsel %vm628_vm0, %v3187_v35, 0  ;;  %v569_v58 = vshll.u32 %v3757_v3, 16  ;;  %v567_v62 = vor.u32 %v3774_v7, %v563_v24  ;;  %v4903_v35 = vshll.u32 %v3549_v19, 16 }
  0x58   : > { %2309 = vmatpush.bf16.msra.mxu0 %v2300_v2  ;;  %v1263_v24 = vrot.slane %v3691_v42, 1  ;;  %v872_v2 = vrot.slane %v3546_v18, 1  ;;  %v1267_v18 = vrot.slane %v3737_v29, 1 }
  0x59   : > { %v571_v30 = vrot.slane %v569_v58, 1  ;;  %v1261_v55 = vrot.slane %v4903_v35, 2  ;;  %v875_v58 = vrot.slane %v3604_v47, 1  ;;  %v877_v35 = vrot.slane %v3666_v32, 1 }
  0x5b   : > { %v572_v4 = vsel %vm424_vm1, %v567_v62, %v571_v30  ;;  %v1265_v62 = vor.u32 %v1264_v61, %v1263_v24  ;;  %v878_v24 = vsel %vm871_vm3, %v875_v58, %v877_v35 }
  0x64   : > { %3056 = vmatmul.msk.bf16.gmra.mxu1 %vm573_vm2, %v3549_v19 }
  0x65   : > { %3049 = vmatmul.msk.bf16.gmra.mxu2 %vm573_vm2, %v532_v41  ;;  %v873_v41 = vrot.slane %v3549_v19, 1 }
  0x66   : > { %3054 = vmatmul.msk.bf16.gmra.mxu3 %vm573_vm2, %v572_v4  ;;  %v1262_v4 = vor.u32 %v1261_v55, %v1260_v5  ;;  %v1268_v5 = vrot.slane %v3694_v45, 2 }
  0x67   : > { %3041 = vmatmul.msk.bf16.gmra.mxu0 %vm573_vm2, %v468_v37  ;;  %v874_v37 = vsel %vm871_vm3, %v872_v2, %v873_v41  ;;  %v876_v30 = vsel %vm871_vm3, %v873_v41, %v875_v58  ;;  %v1271_v2 = vrot.slane %v3713_v63, 1  ;;  %v1272_v41 = vrot.slane %v3702_v1, 2 }
  0x68   : > { %v1266_v59 = vsel %vm1259_vm4, %v1262_v4, %v1265_v62  ;;  %v1269_v55 = vor.u32 %v1268_v5, %v1267_v18  ;;  %v879_v4 = vrot.slane %v3685_v40, 1  ;;  %v881_v18 = vrot.slane %v3516_v8, 1 }
  0x6a   : > { %v1270_v61 = vsel %vm1259_vm4, %v1265_v62, %v1269_v55  ;;  %v880_v58 = vsel %vm871_vm3, %v877_v35, %v879_v4  ;;  %v882_v35 = vsel %vm871_vm3, %v879_v4, %v881_v18  ;;  %v1279_v4 = vrot.slane %v3607_v48, 1 }
  0x6b   : > { %v1284_v48 = vrot.slane %v3610_v49, 2 }
  0x74   : > { %3057 = vmatmul.msk.bf16.gmra.mxu1 %vm573_vm2, %v3604_v47 }
  0x75   : > { %3074 = vmatmul.msk.bf16.vlgmr.msrb.gmra.mxu2 %vm573_vm2, %v874_v37  ;;  %v1273_v37 = vor.u32 %v1272_v41, %v1271_v2 }
  0x76   : > { %3093 = vmatmul.msk.bf16.vlgmr.msrb.gmra.mxu3 %vm573_vm2, %v876_v30 }
  0x77   : > { %3112 = vmatmul.msk.bf16.vlgmr.msrb.gmra.mxu0 %vm573_vm2, %v1266_v59  ;;  %v1274_v62 = vsel %vm1259_vm4, %v1269_v55, %v1273_v37  ;;  %v1276_v59 = vrot.slane %v3534_v14, 2 }
  0x84   : > { %3058 = vmatmul.msk.bf16.gmra.mxu1 %vm573_vm2, %v3666_v32 }
  0x85   : > { %3075 = vmatmul.msk.bf16.gmra.mxu2 %vm573_vm2, %v876_v30  ;;  %v1275_v30 = vrot.slane %v3537_v15, 1 }
  0x86   : > { %3094 = vmatmul.msk.bf16.gmra.mxu3 %vm573_vm2, %v878_v24 }
  0x87   : > { %3113 = vmatmul.msk.bf16.gmra.mxu0 %vm573_vm2, %v1270_v61  ;;  %v1277_v5 = vor.u32 %v1276_v59, %v1275_v30  ;;  %v1280_v59 = vrot.slane %v3540_v16, 2 }
  0x89   : > { %v1278_v55 = vsel %vm1259_vm4, %v1273_v37, %v1277_v5  ;;  %v1281_v14 = vor.u32 %v1280_v59, %v1279_v4 }
  0x94   : > { %3059 = vmatmul.msk.bf16.gmra.mxu1 %vm573_vm2, %v3685_v40 }
  0x95   : > { %3076 = vmatmul.msk.bf16.gmra.mxu2 %vm573_vm2, %v878_v24 }
  0x96   : > { %3095 = vmatmul.msk.bf16.gmra.mxu3 %vm573_vm2, %v880_v58 }
  0x97   : > { %3114 = vmatmul.msk.bf16.gmra.mxu0 %vm573_vm2, %v1274_v62 }
  0xa1   : > { %v3824_v61 = vpop.f32.mrf.mxu1 }
  0xa4   : > { %v641_v2 = vpop.f32.mrf.mxu0  ;;  %3060 = vmatmul.msk.bf16.gmra.mxu1 %vm573_vm2, %v3516_v8  ;;  %v883_v8 = vrot.slane %v3519_v9, 1 }
  0xa5   : > { %3077 = vmatmul.msk.bf16.gmra.mxu2 %vm573_vm2, %v880_v58 }
  0xa6   : > { %3096 = vmatmul.msk.bf16.gmra.mxu3 %vm573_vm2, %v882_v35 }
  0xa7   : > { %3115 = vmatmul.msk.bf16.gmra.mxu0 %vm573_vm2, %v1278_v55  ;;  %v884_v55 = vsel %vm871_vm3, %v881_v18, %v883_v8  ;;  %v1283_v18 = vrot.slane %v3669_v33, 1  ;;  %v1288_v33 = vrot.slane %v3543_v17, 2 }
  0xa8   : > { %v3833_v24 = vpop.f32.mrf.mxu2 }
  0xa9   : > { %v3835_v41 = vpop.f32.mrf.mxu3  ;;  %v3837_v62 = vpop.f32.mrf.mxu1  ;;  %v1285_v63 = vor.u32 %v1284_v48, %v1283_v18 }
  0xaa   : > { %4904 = vst [vmem:[#allocation28_spill] sm:$0xff] %v3835_v41  ;;  %v1282_v41 = vsel %vm1259_vm4, %v1277_v5, %v1281_v14 }
  0xac   : > { %v643_v30 = vpop.f32.mrf.mxu0 }
  0xb0   : > { %v3842_v58 = vpop.f32.mrf.mxu2 }
  0xb1   : > { %v3844_v37 = vpop.f32.mrf.mxu3  ;;  %v3846_v15 = vpop.f32.mrf.mxu1 }
  0xb2   : > { %4905 = vst [vmem:[#allocation29_spill] sm:$0xff] %v3844_v37 }
  0xb4   : > { %v646_v1 = vpop.f32.mrf.mxu0  ;;  %3061 = vmatmul.msk.bf16.gmra.mxu1 %vm573_vm2, %v3519_v9  ;;  %v885_v9 = vrot.slane %v3593_v43, 1 }
  0xb5   : > { %3078 = vmatmul.msk.bf16.gmra.mxu2 %vm573_vm2, %v882_v35 }
  0xb6   : > { %3097 = vmatmul.msk.bf16.gmra.mxu3 %vm573_vm2, %v884_v55 }
  0xb7   : > { %3116 = vmatmul.msk.bf16.gmra.mxu0 %vm573_vm2, %v1282_v41  ;;  %v886_v41 = vsel %vm871_vm3, %v883_v8, %v885_v9  ;;  %v1287_v8 = vrot.slane %v3552_v20, 1 }
  0xb8   : > { %v3855_v16 = vpop.f32.mrf.mxu2 }
  0xb9   : > { %4906 = vst [vmem:[#allocation30_spill] sm:$0xff] %v3855_v16  ;;  %v3857_v37 = vpop.f32.mrf.mxu3  ;;  %v3859_v4 = vpop.f32.mrf.mxu1 }
  0xba   : > { %4907 = vst [vmem:[#allocation31_spill] sm:$0xff] %v3857_v37  ;;  %v1286_v37 = vsel %vm1259_vm4, %v1281_v14, %v1285_v63 }
  0xbc   : > { %v648_v59 = vpop.f32.mrf.mxu0 }
  0xc0   : > { %v3864_v35 = vpop.f32.mrf.mxu2 }
  0xc1   : > { %4908 = vst [vmem:[#allocation32_spill] sm:$0xff] %v3864_v35  ;;  %v3866_v5 = vpop.f32.mrf.mxu3  ;;  %v3868_v40 = vpop.f32.mrf.mxu1  ;;  %v1289_v35 = vor.u32 %v1288_v33, %v1287_v8  ;;  %v1291_v8 = vrot.slane %v3613_v50, 1 }
  0xc2   : > { %4909 = vst [vmem:[#allocation33_spill] sm:$0xff] %v3866_v5 }
  0xc4   : > { %v651_v45 = vpop.f32.mrf.mxu0  ;;  %3062 = vmatmul.msk.bf16.gmra.mxu1 %vm573_vm2, %v3593_v43  ;;  %v887_v43 = vrot.slane %v3522_v10, 1 }
  0xc5   : > { %3079 = vmatmul.msk.bf16.gmra.mxu2 %vm573_vm2, %v884_v55 }
  0xc6   : > { %3098 = vmatmul.msk.bf16.gmra.mxu3 %vm573_vm2, %v886_v41 }
  0xc7   : > { %3117 = vmatmul.msk.bf16.gmra.mxu0 %vm573_vm2, %v1286_v37 }
  0xc8   : > { %v3877_v49 = vpop.f32.mrf.mxu2 }
  0xc9   : > { %4910 = vst [vmem:[#allocation34_spill] sm:$0xff] %v3877_v49  ;;  %v3879_v5 = vpop.f32.mrf.mxu3  ;;  %v3881_v48 = vpop.f32.mrf.mxu1  ;;  %v888_v49 = vsel %vm871_vm3, %v885_v9, %v887_v43 }
  0xca   : > { %4911 = vst [vmem:[#allocation35_spill] sm:$0xff] %v3879_v5  ;;  %v1290_v5 = vsel %vm1259_vm4, %v1285_v63, %v1289_v35 }
  0xcc   : > { %v653_v18 = vpop.f32.mrf.mxu0 }
  0xd0   : > { %v3886_v55 = vpop.f32.mrf.mxu2 }
  0xd1   : > { %4912 = vst [vmem:[#allocation36_spill] sm:$0xff] %v3886_v55  ;;  %v3888_v14 = vpop.f32.mrf.mxu3  ;;  %v779_v29 = vpop.f32.mrf.mxu1 }
  0xd2   : > { %4913 = vst [vmem:[#allocation37_spill] sm:$0xff] %v3888_v14  ;;  %v780_v37 = vadd.f32 %v779_v29, %v641_v2 }
  0xd4   : > { %v3891_v56 = vpop.f32.mrf.mxu0  ;;  %3063 = vmatmul.msk.bf16.gmra.mxu1 %vm573_vm2, %v3522_v10  ;;  %v1292_v10 = vrot.slane %v3555_v21, 2 }
  0xd5   : > { %3080 = vmatmul.msk.bf16.gmra.mxu2 %vm573_vm2, %v886_v41  ;;  %v889_v41 = vrot.slane %v3525_v11, 1 }
  0xd6   : > { %3099 = vmatmul.msk.bf16.gmra.mxu3 %vm573_vm2, %v888_v49  ;;  %v1293_v20 = vor.u32 %v1292_v10, %v1291_v8 }
  0xd7   : > { %3118 = vmatmul.msk.bf16.gmra.mxu0 %vm573_vm2, %v1290_v5 }
  0xd8   : > { %v3899_v17 = vpop.f32.mrf.mxu2 }
  0xd9   : > { %4914 = vst [vmem:[#allocation38_spill] sm:$0xff] %v3899_v17  ;;  %v3901_v33 = vpop.f32.mrf.mxu3  ;;  %v781_v29 = vpop.f32.mrf.mxu1  ;;  %v890_v17 = vsel %vm871_vm3, %v887_v43, %v889_v41 }
  0xda   : > { %4915 = vst [vmem:[#allocation39_spill] sm:$0xff] %v3901_v33  ;;  %v782_v2 = vadd.f32 %v781_v29, %v643_v30  ;;  %v1294_v30 = vsel %vm1259_vm4, %v1289_v35, %v1293_v20 }
  0xdc   : > { %v3903_v9 = vpop.f32.mrf.mxu0 }
  0xe0   : > { %v3908_v14 = vpop.f32.mrf.mxu2 }
  0xe1   : > { %4916 = vst [vmem:[#allocation40_spill] sm:$0xff] %v3908_v14  ;;  %v3910_v63 = vpop.f32.mrf.mxu3  ;;  %v784_v5 = vpop.f32.mrf.mxu1 }
  0xe2   : > { %4917 = vst [vmem:[#allocation41_spill] sm:$0xff] %v3910_v63  ;;  %v785_v55 = vadd.f32 %v784_v5, %v646_v1  ;;  %v1295_v5 = vrot.slane %v3672_v34, 1  ;;  %v1300_v34 = vrot.slane %v3675_v36, 2 }
  0xe4   : > { %v3913_v33 = vpop.f32.mrf.mxu0  ;;  %3064 = vmatmul.msk.bf16.gmra.mxu1 %vm573_vm2, %v3525_v11  ;;  %v1296_v11 = vrot.slane %v3616_v51, 2 }
  0xe5   : > { %3081 = vmatmul.msk.bf16.gmra.mxu2 %vm573_vm2, %v888_v49  ;;  %v891_v49 = vrot.slane %v3596_v44, 1 }
  0xe6   : > { %3100 = vmatmul.msk.bf16.gmra.mxu3 %vm573_vm2, %v890_v17  ;;  %v1297_v21 = vor.u32 %v1296_v11, %v1295_v5 }
  0xe7   : > { %3119 = vmatmul.msk.bf16.gmra.mxu0 %vm573_vm2, %v1294_v30 }
  0xe8   : > { %v3921_v29 = vpop.f32.mrf.mxu2 }
  0xe9   : > { %4918 = vst [vmem:[#allocation42_spill] sm:$0xff] %v3921_v29  ;;  %v3923_v8 = vpop.f32.mrf.mxu3  ;;  %v786_v1 = vpop.f32.mrf.mxu1  ;;  %v892_v29 = vsel %vm871_vm3, %v889_v41, %v891_v49  ;;  %v1299_v41 = vrot.slane %v3728_v52, 1 }
  0xea   : > { %4919 = vst [vmem:[#allocation43_spill] sm:$0xff] %v3923_v8  ;;  %v787_v10 = vadd.f32 %v786_v1, %v648_v59  ;;  %v1298_v59 = vsel %vm1259_vm4, %v1293_v20, %v1297_v21 }
  0xeb   : > { %v1301_v42 = vor.u32 %v1300_v34, %v1299_v41 }
  0xec   : > { %v3925_v43 = vpop.f32.mrf.mxu0 }
  0xf0   : > { %v3930_v63 = vpop.f32.mrf.mxu2 }
  0xf1   : > { %4920 = vst [vmem:[#allocation44_spill] sm:$0xff] %v3930_v63  ;;  %v3932_v35 = vpop.f32.mrf.mxu3  ;;  %v789_v30 = vpop.f32.mrf.mxu1 }
  0xf2   : > { %4921 = vst [vmem:[#allocation45_spill] sm:$0xff] %v3932_v35  ;;  %v790_v50 = vadd.f32 %v789_v30, %v651_v45 }
  0xf4   : > { %v1411_v8 = vpop.f32.mrf.mxu0  ;;  %3065 = vmatmul.msk.bf16.gmra.mxu1 %vm573_vm2, %v3596_v44 }
  0xf5   : > { %3082 = vmatmul.msk.bf16.gmra.mxu2 %vm573_vm2, %v890_v17  ;;  %v893_v17 = vrot.slane %v3655_v25, 1 }
  0xf6   : > { %3101 = vmatmul.msk.bf16.gmra.mxu3 %vm573_vm2, %v892_v29 }
  0xf7   : > { %3120 = vmatmul.msk.bf16.gmra.mxu0 %vm573_vm2, %v1298_v59 }
  0xf8   : > { %v975_v1 = vpop.f32.mrf.mxu2 }
  0xf9   : > { %v1065_v51 = vadd.f32 %v975_v1, %v780_v37  ;;  %v1131_v35 = vpop.f32.mrf.mxu3  ;;  %v791_v5 = vpop.f32.mrf.mxu1 }
  0xfa   : > { %v792_v45 = vadd.f32 %v791_v5, %v653_v18 }
  0xfb   : > { %v1221_v11 = vadd.f32 %v1131_v35, %v1065_v51  ;;  %v894_v51 = vsel %vm871_vm3, %v891_v49, %v893_v17 }
  0xfc   : > { %v1413_v30 = vpop.f32.mrf.mxu0 }
  0xfd   : > { %v3943_v44 = vadd.f32 %v1411_v8, %v1221_v11  ;;  %v1302_v8 = vsel %vm1259_vm4, %v1297_v21, %v1301_v42 }
 0x100   : > { %v977_v20 = vpop.f32.mrf.mxu2 }
 0x101   : > { %v1066_v63 = vadd.f32 %v977_v20, %v782_v2  ;;  %v1133_v14 = vpop.f32.mrf.mxu3  ;;  %v794_v59 = vpop.f32.mrf.mxu1 }
 0x102   : > { %v795_v37 = vadd.f32 %v794_v59, %v3891_v56 }
 0x103   : > { %v1222_v16 = vadd.f32 %v1133_v14, %v1066_v63 }
 0x104   : > { %v1416_v18 = vpop.f32.mrf.mxu0  ;;  %3066 = vmatmul.msk.bf16.gmra.mxu1 %vm573_vm2, %v3655_v25  ;;  %v1303_v25 = vrot.slane %v3663_v31, 1 }
 0x105   : > { %3083 = vmatmul.msk.bf16.gmra.mxu2 %vm573_vm2, %v892_v29  ;;  %v3952_v35 = vadd.f32 %v1413_v30, %v1222_v16  ;;  %v1304_v29 = vrot.slane %v3648_v6, 2  ;;  %v895_v16 = vrot.slane %v3639_v0, 1 }
 0x106   : > { %3102 = vmatmul.msk.bf16.gmra.mxu3 %vm573_vm2, %v894_v51 }
 0x107   : > { %3121 = vmatmul.msk.bf16.gmra.mxu0 %vm573_vm2, %v1302_v8  ;;  %v1305_v41 = vor.u32 %v1304_v29, %v1303_v25  ;;  %v896_v8 = vsel %vm871_vm3, %v893_v17, %v895_v16 }
 0x108   : > { %v980_v34 = vpop.f32.mrf.mxu2 }
 0x109   : > { %v1067_v14 = vadd.f32 %v980_v34, %v785_v55  ;;  %v1136_v2 = vpop.f32.mrf.mxu3  ;;  %v796_v56 = vpop.f32.mrf.mxu1 }
 0x10a   : > { %v797_v49 = vadd.f32 %v796_v56, %v3903_v9 }
 0x10b   : > { %v1223_v63 = vadd.f32 %v1136_v2, %v1067_v14 }
 0x10c   : > { %v1418_v1 = vpop.f32.mrf.mxu0 }
 0x10d   : > { %v3959_v5 = vadd.f32 %v1416_v18, %v1223_v63  ;;  %v1306_v18 = vsel %vm1259_vm4, %v1301_v42, %v1305_v41  ;;  %v897_v42 = vrot.slane %v3528_v12, 1 }
 0x110   : > { %v982_v21 = vpop.f32.mrf.mxu2 }
 0x111   : > { %v1068_v11 = vadd.f32 %v982_v21, %v787_v10  ;;  %v1138_v30 = vpop.f32.mrf.mxu3  ;;  %v799_v20 = vpop.f32.mrf.mxu1 }
 0x112   : > { %v800_v59 = vadd.f32 %v799_v20, %v3913_v33  ;;  %v898_v20 = vsel %vm871_vm3, %v895_v16, %v897_v42 }
 0x113   : > { %v1224_v55 = vadd.f32 %v1138_v30, %v1068_v11 }
 0x114   : > { %v1421_v9 = vpop.f32.mrf.mxu0  ;;  %3067 = vmatmul.msk.bf16.gmra.mxu1 %vm573_vm2, %v3639_v0  ;;  %v1307_v0 = vrot.slane %v3561_v23, 1 }
 0x115   : > { %3084 = vmatmul.msk.bf16.gmra.mxu2 %vm573_vm2, %v894_v51  ;;  %v3968_v34 = vadd.f32 %v1418_v1, %v1224_v55  ;;  %v1308_v51 = vrot.slane %v3558_v22, 2 }
 0x116   : > { %3103 = vmatmul.msk.bf16.gmra.mxu3 %vm573_vm2, %v896_v8 }
 0x117   : > { %3122 = vmatmul.msk.bf16.gmra.mxu0 %vm573_vm2, %v1306_v18  ;;  %v1309_v11 = vor.u32 %v1308_v51, %v1307_v0 }
 0x118   : > { %v985_v10 = vpop.f32.mrf.mxu2 }
 0x119   : > { %v1069_v14 = vadd.f32 %v985_v10, %v790_v50  ;;  %v1141_v2 = vpop.f32.mrf.mxu3  ;;  %v801_v33 = vpop.f32.mrf.mxu1 }
 0x11a   : > { %v802_v17 = vadd.f32 %v801_v33, %v3925_v43  ;;  %v1310_v43 = vsel %vm1259_vm4, %v1305_v41, %v1309_v11  ;;  %v1311_v33 = vrot.slane %v3622_v53, 1  ;;  %v899_v41 = vrot.slane %v3531_v13, 1 }
 0x11b   : > { %v1225_v56 = vadd.f32 %v1141_v2, %v1069_v14 }
 0x11c   : > { %v1423_v63 = vpop.f32.mrf.mxu0 }
 0x11d   : > { %v3975_v25 = vadd.f32 %v1421_v9, %v1225_v56 }
 0x120   : > { %v987_v1 = vpop.f32.mrf.mxu2 }
 0x121   : > { %v1070_v29 = vadd.f32 %v987_v1, %v792_v45  ;;  %v1143_v21 = vpop.f32.mrf.mxu3  ;;  %v804_v30 = vpop.f32.mrf.mxu1 }
 0x123   : > { %v1226_v50 = vadd.f32 %v1143_v21, %v1070_v29 }
 0x124   : > { %v1426_v55 = vpop.f32.mrf.mxu0  ;;  %3068 = vmatmul.msk.bf16.gmra.mxu1 %vm573_vm2, %v3528_v12  ;;  %v1312_v12 = vrot.slane %v3567_v27, 2 }
 0x125   : > { %3085 = vmatmul.msk.bf16.gmra.mxu2 %vm573_vm2, %v896_v8  ;;  %v3983_v9 = vadd.f32 %v1423_v63, %v1226_v50 }
 0x126   : > { %3104 = vmatmul.msk.bf16.gmra.mxu3 %vm573_vm2, %v898_v20  ;;  %v1313_v51 = vor.u32 %v1312_v12, %v1311_v33 }
 0x127   : > { %3123 = vmatmul.msk.bf16.gmra.mxu0 %vm573_vm2, %v1310_v43 }
 0x128   : > { %v990_v45 = vpop.f32.mrf.mxu2  ;;  %v1314_v50 = vsel %vm1259_vm4, %v1309_v11, %v1313_v51  ;;  %v901_v11 = vrot.slane %v3600_v46, 1 }
 0x129   : > { %v1071_v18 = vadd.f32 %v990_v45, %v795_v37  ;;  %v1146_v10 = vpop.f32.mrf.mxu3  ;;  %v806_v14 = vpop.f32.mrf.mxu1  ;;  %v900_v37 = vsel %vm871_vm3, %v897_v42, %v899_v41 }
 0x12b   : > { %v1227_v2 = vadd.f32 %v1146_v10, %v1071_v18 }
 0x12c   : > { %v1428_v16 = vpop.f32.mrf.mxu0 }
 0x12d   : > { %v3989_v56 = vadd.f32 %v1426_v55, %v1227_v2  ;;  %v1315_v2 = vrot.slane %v3679_v38, 1 }
 0x130   : > { %v992_v8 = vpop.f32.mrf.mxu2 }
 0x131   : > { %v1072_v63 = vadd.f32 %v992_v8, %v797_v49  ;;  %v1148_v0 = vpop.f32.mrf.mxu3  ;;  %v809_v1 = vpop.f32.mrf.mxu1 }
 0x133   : > { %v1228_v29 = vadd.f32 %v1148_v0, %v1072_v63 }
 0x134   : > { %v1431_v21 = vpop.f32.mrf.mxu0  ;;  %3069 = vmatmul.msk.bf16.gmra.mxu1 %vm573_vm2, %v3531_v13  ;;  %v1316_v13 = vrot.slane %v3625_v54, 2 }
 0x135   : > { %3086 = vmatmul.msk.bf16.gmra.mxu2 %vm573_vm2, %v898_v20  ;;  %v3997_v55 = vadd.f32 %v1428_v16, %v1228_v29 }
 0x136   : > { %3105 = vmatmul.msk.bf16.gmra.mxu3 %vm573_vm2, %v900_v37  ;;  %v1317_v8 = vor.u32 %v1316_v13, %v1315_v2  ;;  %v903_v13 = vrot.slane %v3658_v28, 1 }
 0x137   : > { %3124 = vmatmul.msk.bf16.gmra.mxu0 %vm573_vm2, %v1314_v50 }
 0x138   : > { %v995_v49 = vpop.f32.mrf.mxu2  ;;  %v1318_v50 = vsel %vm1259_vm4, %v1313_v51, %v1317_v8 }
 0x139   : > { %v1073_v43 = vadd.f32 %v995_v49, %v800_v59  ;;  %v1151_v45 = vpop.f32.mrf.mxu3  ;;  %v811_v18 = vpop.f32.mrf.mxu1  ;;  %v902_v59 = vsel %vm871_vm3, %v899_v41, %v901_v11 }
 0x13b   : > { %v1229_v10 = vadd.f32 %v1151_v45, %v1073_v43 }
 0x13c   : > { %v1433_v42 = vpop.f32.mrf.mxu0 }
 0x13d   : > { %v4003_v33 = vadd.f32 %v1431_v21, %v1229_v10 }
 0x140   : > { %v997_v20 = vpop.f32.mrf.mxu2 }
 0x141   : > { %v1074_v16 = vadd.f32 %v997_v20, %v802_v17  ;;  %v1153_v12 = vpop.f32.mrf.mxu3  ;;  %v814_v63 = vpop.f32.mrf.mxu1  ;;  %v805_v17 = vadd.f32 %v804_v30, %v3824_v61 }
 0x143   : > { %v1230_v0 = vadd.f32 %v1153_v12, %v1074_v16 }
 0x144   : > { %v1436_v29 = vpop.f32.mrf.mxu0  ;;  %3070 = vmatmul.msk.bf16.gmra.mxu1 %vm573_vm2, %v3600_v46  ;;  %v1319_v46 = vrot.slane %v3731_v57, 1 }
 0x145   : > { %3087 = vmatmul.msk.bf16.gmra.mxu2 %vm573_vm2, %v900_v37  ;;  %v4011_v21 = vadd.f32 %v1433_v42, %v1230_v0  ;;  %v1320_v37 = vrot.slane %v3682_v39, 2  ;;  %v807_v42 = vadd.f32 %v806_v14, %v3837_v62  ;;  %v810_v14 = vadd.f32 %v809_v1, %v3846_v15 }
 0x146   : > { %3106 = vmatmul.msk.bf16.gmra.mxu3 %vm573_vm2, %v902_v59 }
 0x147   : > { %3125 = vmatmul.msk.bf16.gmra.mxu0 %vm573_vm2, %v1318_v50  ;;  %v1321_v16 = vor.u32 %v1320_v37, %v1319_v46  ;;  %v904_v50 = vsel %vm871_vm3, %v901_v11, %v903_v13  ;;  %v4044_v37 = vrot.slane %v3721_v26, 1 }
 0x148   : > { %v1000_v49 = vpop.f32.mrf.mxu2 }
 0x149   : > { %v1075_v43 = vadd.f32 %v1000_v49, %v805_v17  ;;  %v1156_v45 = vpop.f32.mrf.mxu3  ;;  %v4016_v41 = vpop.f32.mrf.mxu1 }
 0x14b   : > { %v1231_v10 = vadd.f32 %v1156_v45, %v1075_v43 }
 0x14c   : > { %v1438_v2 = vpop.f32.mrf.mxu0 }
 0x14d   : > { %v4020_v51 = vadd.f32 %v1436_v29, %v1231_v10  ;;  %v1322_v29 = vsel %vm1259_vm4, %v1317_v8, %v1321_v16  ;;  %v1324_v8 = vrot.slane %v3734_v60, 2 }
 0x150   : > { %v1002_v61 = vpop.f32.mrf.mxu2 }
 0x151   : > { %v1076_v30 = vadd.f32 %v1002_v61, %v807_v42  ;;  %v1158_v20 = vpop.f32.mrf.mxu3  ;;  %v4024_v12 = vpop.f32.mrf.mxu1 }
 0x153   : > { %v1232_v0 = vadd.f32 %v1158_v20, %v1076_v30 }
 0x154   : > { %v1441_v17 = vpop.f32.mrf.mxu0  ;;  %3071 = vmatmul.msk.bf16.gmra.mxu1 %vm573_vm2, %v3658_v28 }
 0x155   : > { %3088 = vmatmul.msk.bf16.gmra.mxu2 %vm573_vm2, %v902_v59  ;;  %v4031_v62 = vadd.f32 %v1438_v2, %v1232_v0  ;;  %v1323_v59 = vrot.slane %v3774_v7, 1  ;;  %v812_v2 = vadd.f32 %v811_v18, %v3859_v4  ;;  %v906_v0 = vsel %vm871_vm3, %v903_v13, %v4044_v37 }
 0x156   : > { %3107 = vmatmul.msk.bf16.gmra.mxu3 %vm573_vm2, %v904_v50 }
 0x157   : > { %3126 = vmatmul.msk.bf16.gmra.mxu0 %vm573_vm2, %v1322_v29  ;;  %v1325_v61 = vor.u32 %v1324_v8, %v1323_v59  ;;  %v815_v29 = vadd.f32 %v814_v63, %v3868_v40  ;;  %v1540_v63 = vrot.slane %v3549_v19, 2  ;;  %v1541_v8 = vrot.slane %v3604_v47, 2 }
 0x158   : > { %v1005_v49 = vpop.f32.mrf.mxu2 }
 0x159   : > { %v1077_v43 = vadd.f32 %v1005_v49, %v810_v14  ;;  %v1161_v45 = vpop.f32.mrf.mxu3  ;;  %v4036_v11 = vpop.f32.mrf.mxu1  ;;  %v1326_v4 = vsel %vm1259_vm4, %v1321_v16, %v1325_v61 }
 0x15b   : > { %v1233_v10 = vadd.f32 %v1161_v45, %v1077_v43  ;;  %v4922_v43 = vld [vmem:[#allocation27_spill] sm:$0xff] }
 0x15c   : > { %v1443_v28 = vpop.f32.mrf.mxu0  ;;  %v4879_v45 = vshrl.u32 %v4922_v43, 16 }
 0x15d   : > { %v4038_v46 = vadd.f32 %v1441_v17, %v1233_v10 }
 0x160   : > { %v1007_v15 = vpop.f32.mrf.mxu2 }
 0x161   : > { %v1078_v1 = vadd.f32 %v1007_v15, %v812_v2  ;;  %v1163_v42 = vpop.f32.mrf.mxu3  ;;  %v4046_v30 = vpop.f32.mrf.mxu1  ;;  %v3235_v2 = vld [vmem:[%s3513_s8 + $0x98] sm:$0xff]   ;;  %v817_v15 = vadd.f32 %v4016_v41, %v3881_v48 }
 0x163   : > { %v1234_v20 = vadd.f32 %v1163_v42, %v1078_v1  ;;  %v1109_v1 = vrot.slane %v4922_v43, 1 }
 0x164   : > { %v1446_v17 = vpop.f32.mrf.mxu0  ;;  %3072 = vmatmul.msk.bf16.gmra.mxu1 %vm573_vm2, %v3721_v26  ;;  %v4878_v26 = vshll.u32 %v4922_v43, 16 }
 0x165   : > { %3089 = vmatmul.msk.bf16.gmra.mxu2 %vm573_vm2, %v904_v50  ;;  %v4054_v18 = vadd.f32 %v1443_v28, %v1234_v20  ;;  %v1330_v28 = vrot.slane %v4879_v45, 1  ;;  %v1110_v19 = vsel %vm871_vm3, %v4044_v37, %v1109_v1 }
 0x166   : > { %3108 = vmatmul.msk.bf16.gmra.mxu3 %vm573_vm2, %v906_v0  ;;  %v1333_v59 = vrot.slane %v4878_v26, 2 }
 0x167   : > { %3127 = vmatmul.msk.bf16.gmra.mxu0 %vm573_vm2, %v1326_v4 }
 0x168   : > { %v1010_v14 = vpop.f32.mrf.mxu2 }
 0x169   : > { %v1079_v49 = vadd.f32 %v1010_v14, %v815_v29  ;;  %v1166_v13 = vpop.f32.mrf.mxu3  ;;  %v4061_v10 = vpop.f32.mrf.mxu1  ;;  %v1334_v29 = vor.u32 %v1333_v59, %v1330_v28  ;;  %v3232_v14 = vunpack.c.l.b16 %v3235_v2  ;;  %v820_v28 = vadd.f32 %v4024_v12, %v3833_v24 }
 0x16a   : > { %v1543_v24 = vrot.slane %v3666_v32, 2  ;;  %v822_v12 = vadd.f32 %v4036_v11, %v3842_v58 }
 0x16b   : > { %v1235_v50 = vadd.f32 %v1166_v13, %v1079_v49  ;;  %v1335_v48 = vsel %vm1259_vm4, %v1325_v61, %v1334_v29  ;;  %v4083_v41 = vpack.c.b16 %v3232_v14, %v3232_v14 }
 0x16c   : > { %v1448_v16 = vpop.f32.mrf.mxu0 }
 0x16d   : > { %v4067_v40 = vadd.f32 %v1446_v17, %v1235_v50  ;;  %v1542_v17 = vsel %vm1539_vm5, %v1540_v63, %v1541_v8 }
 0x170   : > { %v1012_v42 = vpop.f32.mrf.mxu2 }
 0x171   : > { %v1080_v20 = vadd.f32 %v1012_v42, %v817_v15  ;;  %v1168_v4 = vpop.f32.mrf.mxu3  ;;  %v4075_v49 = vpop.f32.mrf.mxu1  ;;  %v1340_v15 = vshll.u32 %v4083_v41, 16 }
 0x173   : > { %v1236_v13 = vadd.f32 %v1168_v4, %v1080_v20  ;;  %v1342_v4 = vrot.slane %v1340_v15, 2  ;;  %v4923_v15 = vld [vmem:[#allocation30_spill] sm:$0xff] }
 0x174   : > { %v1451_v47 = vpop.f32.mrf.mxu0  ;;  %3131 = vmatmul.msk.bf16.vlgmr.msra.gmra.mxu1 %vm573_vm2, %v1542_v17  ;;  %v907_v17 = vrot.slane %v3757_v3, 1 }
 0x175   : > { %3090 = vmatmul.msk.bf16.gmra.mxu2 %vm573_vm2, %v906_v0  ;;  %v4085_v50 = vadd.f32 %v1448_v16, %v1236_v13  ;;  %v1337_v0 = vshrl.u32 %v4083_v41, 16  ;;  %v1111_v13 = vrot.slane %v4083_v41, 1 }
 0x176   : > { %3109 = vmatmul.msk.bf16.gmra.mxu3 %vm573_vm2, %v1110_v19 }
 0x177   : > { %3128 = vmatmul.msk.bf16.gmra.mxu0 %vm573_vm2, %v1335_v48  ;;  %v1339_v16 = vrot.slane %v1337_v0, 1  ;;  %v1112_v3 = vsel %vm871_vm3, %v1109_v1, %v1111_v13  ;;  %v4925_v13 = vld [vmem:[#allocation18_spill] sm:$0xff] }
 0x178   : > { %v1015_v59 = vpop.f32.mrf.mxu2 }
 0x179   : > { %v1081_v63 = vadd.f32 %v1015_v59, %v820_v28  ;;  %v1171_v2 = vpop.f32.mrf.mxu3  ;;  %v4093_v42 = vpop.f32.mrf.mxu1  ;;  %v1343_v59 = vor.u32 %v1342_v4, %v1339_v16  ;;  %v4924_v4 = vld [vmem:[#allocation22_spill] sm:$0xff] }
 0x17b   : > { %v1237_v61 = vadd.f32 %v1171_v2, %v1081_v63  ;;  %v908_v63 = vsel %vm871_vm3, %v4044_v37, %v907_v17  ;;  %v1344_v58 = vsel %vm1259_vm4, %v1334_v29, %v1343_v59  ;;  %v1928_v17 = vrot.slane %v4924_v4, 2  ;;  %v4926_v29 = vld [vmem:[#allocation26_spill] sm:$0xff] }
 0x17c   : > { %v1453_v20 = vpop.f32.mrf.mxu0 }
 0x17d   : > { %v4095_v14 = vadd.f32 %v1451_v47, %v1237_v61  ;;  %v1544_v47 = vsel %vm1539_vm5, %v1541_v8, %v1543_v24  ;;  %v825_v61 = vadd.f32 %v4046_v30, %v4923_v15  ;;  %v2513_v30 = vld [vmem:[%s4850_s3] sm:$0xff] }
 0x17e   : > { %v4929_v15 = vld [vmem:[#allocation32_spill] sm:$0xff] }
 0x180   : > { %v1017_v19 = vpop.f32.mrf.mxu2 }
 0x181   : > { %v1082_v48 = vadd.f32 %v1017_v19, %v822_v12  ;;  %v1173_v28 = vpop.f32.mrf.mxu3  ;;  %v4102_v26 = vpop.f32.mrf.mxu1  ;;  %v1929_v19 = vrot.slane %v4925_v13, 3 }
 0x183   : > { %v1238_v2 = vadd.f32 %v1173_v28, %v1082_v48  ;;  %v4927_v48 = vld [vmem:[#allocation23_spill] sm:$0xff] }
 0x184   : > { %v1456_v0 = vpop.f32.mrf.mxu0  ;;  %3132 = vmatmul.msk.bf16.gmra.mxu1 %vm573_vm2, %v1544_v47  ;;  %v1932_v28 = vrot.slane %v4927_v48, 3 }
 0x185   : > { %3091 = vmatmul.msk.bf16.gmra.mxu2 %vm573_vm2, %v908_v63  ;;  %v4111_v11 = vadd.f32 %v1453_v20, %v1238_v2  ;;  %v1931_v20 = vrot.slane %v4926_v29, 2  ;;  %v4928_v2 = vld [vmem:[#allocation21_spill] sm:$0xff] }
 0x186   : > { %3110 = vmatmul.msk.bf16.gmra.mxu3 %vm573_vm2, %v1112_v3  ;;  %v1545_v3 = vrot.slane %v4928_v2, 2  ;;  %v3289_v29 = vld [vmem:[%s3513_s8 + $0x10] sm:$0xff] }
 0x187   : > { %3129 = vmatmul.msk.bf16.gmra.mxu0 %vm573_vm2, %v1344_v58  ;;  %v3403_v58 = vmov 0   ;;  %v2208_v48 = vrot.slane %v3289_v29, 3  ;;  %v4159_v29 = vld [vmem:[%s3513_s8 + $0x28] sm:$0xff] }
 0x188   : > { %v1020_v37 = vpop.f32.mrf.mxu2  ;;  %3285 = vset.pattern.permute.xlu0 %v3403_v58  ;;  %3286 = vset.pattern.permute.xlu1 %v3403_v58  ;;  %v1546_v2 = vsel %vm1539_vm5, %v1543_v24, %v1545_v3 }
 0x189   : > { %v1083_v8 = vadd.f32 %v1020_v37, %v825_v61  ;;  %v1176_v16 = vpop.f32.mrf.mxu3  ;;  %v4117_v1 = vpop.f32.mrf.mxu1  ;;  %v827_v61 = vadd.f32 %v4061_v10, %v4929_v15  ;;  %v1930_v37 = vor.u32 %v1929_v19, %v1928_v17  ;;  %2551 = vperm.xlu0 %3285, %v2513_v30   ;;  %3287 = vset.pattern.permute.xlu2 %v3403_v58  ;;  %v2514_v30 = vld [vmem:[%s4850_s3 + $0x8] sm:$0xff] }
 0x18b   : > { %v1239_v12 = vadd.f32 %v1176_v16, %v1083_v8  ;;  %v1933_v8 = vor.u32 %v1932_v28, %v1931_v20 }
 0x18c   : > { %v1458_v59 = vpop.f32.mrf.mxu0 }
 0x18d   : > { %v4126_v63 = vadd.f32 %v1456_v0, %v1239_v12  ;;  %v2209_v0 = vrot.slane %v3666_v32, 3  ;;  %v1934_v10 = vsel %vm1927_vm6, %v1930_v37, %v1933_v8  ;;  %v4931_v32 = vld [vmem:[#allocation34_spill] sm:$0xff]  ;;  %v4933_v37 = vld [vmem:[#allocation24_spill] sm:$0xff] }
 0x18e   : > { %v830_v28 = vadd.f32 %v4075_v49, %v4931_v32  ;;  %v2515_v49 = vld [vmem:[%s4850_s3 + $0x10] sm:$0xff] }
 0x18f   : > { %v2210_v19 = vsel %vm2207_vm7, %v2208_v48, %v2209_v0  ;;  %v1547_v48 = vrot.slane %v4159_v29, 2  ;;  %2561 = vperm.xlu1 %3286, %v2515_v49  }
 0x190   : > { %v1022_v16 = vpop.f32.mrf.mxu2 }
 0x191   : > { %v1084_v4 = vadd.f32 %v1022_v16, %v827_v61  ;;  %v1178_v13 = vpop.f32.mrf.mxu3  ;;  %v4133_v12 = vpop.f32.mrf.mxu1  ;;  %2556 = vperm.xlu0 %3285, %v2514_v30   ;;  %v1936_v16 = vrot.slane %v4933_v37, 3  ;;  %v1548_v37 = vsel %vm1539_vm5, %v1545_v3, %v1547_v48 }
 0x193   : > { %v1240_v45 = vadd.f32 %v1178_v13, %v1084_v4 }
 0x194   : > { %v1461_v17 = vpop.f32.mrf.mxu0  ;;  %3133 = vmatmul.msk.bf16.gmra.mxu1 %vm573_vm2, %v1546_v2 }
 0x195   : > { %3150 = vmatmul.msk.bf16.vlgmr.msra.gmra.mxu2 %vm573_vm2, %v1544_v47  ;;  %v4140_v20 = vadd.f32 %v1458_v59, %v1240_v45  ;;  %v4932_v59 = vld [vmem:[#allocation25_spill] sm:$0xff] }
 0x196   : > { %3169 = vmatmul.msk.bf16.vlgmr.msra.gmra.mxu3 %vm573_vm2, %v1934_v10  ;;  %v1935_v61 = vrot.slane %v4932_v59, 2  ;;  %v4935_v10 = vld [vmem:[#allocation36_spill] sm:$0xff] }
 0x197   : > { %4930 = vst [vmem:[#allocation27_spill] sm:$0xff] %v4140_v20  ;;  %3188 = vmatmul.msk.bf16.vlgmr.msra.gmra.mxu0 %vm573_vm2, %v2210_v19  ;;  %v832_v19 = vadd.f32 %v4093_v42, %v4935_v10 }
 0x198   : > { %v1025_v24 = vpop.f32.mrf.mxu2  ;;  %v1937_v32 = vor.u32 %v1936_v16, %v1935_v61  ;;  %v4937_v16 = vld [vmem:[#allocation38_spill] sm:$0xff] }
 0x199   : > { %v1085_v58 = vadd.f32 %v1025_v24, %v830_v28  ;;  %v1181_v15 = vpop.f32.mrf.mxu3  ;;  %v4149_v47 = vpop.f32.mrf.mxu1  ;;  %v835_v49 = vadd.f32 %v4102_v26, %v4937_v16  ;;  %v4188_v26 = vld [vmem:[%s3513_s8 + $0x30] sm:$0xff] }
 0x19b   : > { %v1241_v45 = vadd.f32 %v1181_v15, %v1085_v58  ;;  %v3291_v58 = vld [vmem:[%s3513_s8 + $0x20] sm:$0xff] }
 0x19c   : > { %v1463_v4 = vpop.f32.mrf.mxu0  ;;  %v2211_v15 = vrot.slane %v3291_v58, 3 }
 0x19d   : > { %v4156_v13 = vadd.f32 %v1461_v17, %v1241_v45  ;;  %v1938_v45 = vsel %vm1927_vm6, %v1933_v8, %v1937_v32  ;;  %v2516_v8 = vld [vmem:[%s4850_s3 + $0x18] sm:$0xff] }
 0x19e   : > { %v2212_v42 = vsel %vm2207_vm7, %v2209_v0, %v2211_v15  ;;  %2566 = vperm.xlu1 %3286, %v2516_v8  }
 0x19f   : > { %4934 = vst [vmem:[#allocation30_spill] sm:$0xff] %v4156_v13 }
 0x1a0   : > { %v1027_v28 = vpop.f32.mrf.mxu2 }
 0x1a1   : > { %v1086_v24 = vadd.f32 %v1027_v28, %v832_v19  ;;  %v1183_v30 = vpop.f32.mrf.mxu3  ;;  %v4165_v59 = vpop.f32.mrf.mxu1 }
 0x1a3   : > { %v1242_v17 = vadd.f32 %v1183_v30, %v1086_v24  ;;  %v4939_v24 = vld [vmem:[#allocation8_spill] sm:$0xff] }
 0x1a4   : > { %v1466_v13 = vpop.f32.mrf.mxu0  ;;  %3134 = vmatmul.msk.bf16.gmra.mxu1 %vm573_vm2, %v1548_v37  ;;  %v1940_v30 = vrot.slane %v4939_v24, 3 }
 0x1a5   : > { %3151 = vmatmul.msk.bf16.gmra.mxu2 %vm573_vm2, %v1546_v2  ;;  %v4172_v61 = vadd.f32 %v1463_v4, %v1242_v17  ;;  %v4938_v4 = vld [vmem:[#allocation9_spill] sm:$0xff] }
 0x1a6   : > { %3170 = vmatmul.msk.bf16.gmra.mxu3 %vm573_vm2, %v1938_v45  ;;  %v1939_v28 = vrot.slane %v4938_v4, 2  ;;  %v1549_v45 = vrot.slane %v4188_v26, 2 }
 0x1a7   : > { %4936 = vst [vmem:[#allocation22_spill] sm:$0xff] %v4172_v61  ;;  %3189 = vmatmul.msk.bf16.gmra.mxu0 %vm573_vm2, %v2212_v42  ;;  %v4941_v42 = vld [vmem:[#allocation40_spill] sm:$0xff] }
 0x1a8   : > { %v1030_v3 = vpop.f32.mrf.mxu2  ;;  %v837_v16 = vadd.f32 %v4117_v1, %v4941_v42  ;;  %v1550_v4 = vsel %vm1539_vm5, %v1547_v48, %v1549_v45 }
 0x1a9   : > { %v1087_v10 = vadd.f32 %v1030_v3, %v835_v49  ;;  %v1186_v19 = vpop.f32.mrf.mxu3  ;;  %v4181_v2 = vpop.f32.mrf.mxu1  ;;  %v1941_v49 = vor.u32 %v1940_v30, %v1939_v28 }
 0x1ab   : > { %v1243_v0 = vadd.f32 %v1186_v19, %v1087_v10  ;;  %v2213_v10 = vrot.slane %v4159_v29, 3  ;;  %v4943_v29 = vld [vmem:[#allocation42_spill] sm:$0xff] }
 0x1ac   : > { %v1468_v58 = vpop.f32.mrf.mxu0  ;;  %v840_v30 = vadd.f32 %v4133_v12, %v4943_v29  ;;  %v4217_v12 = vld [vmem:[%s3513_s8 + $0x38] sm:$0xff] }
 0x1ad   : > { %v4185_v17 = vadd.f32 %v1466_v13, %v1243_v0  ;;  %v1942_v13 = vsel %vm1927_vm6, %v1937_v32, %v1941_v49  ;;  %v2214_v1 = vsel %vm2207_vm7, %v2211_v15, %v2213_v10 }
 0x1af   : > { %4940 = vst [vmem:[#allocation18_spill] sm:$0xff] %v4185_v17 }
 0x1b0   : > { %v1032_v3 = vpop.f32.mrf.mxu2 }
 0x1b1   : > { %v1088_v8 = vadd.f32 %v1032_v3, %v837_v16  ;;  %v1188_v61 = vpop.f32.mrf.mxu3  ;;  %v4194_v19 = vpop.f32.mrf.mxu1  ;;  %v4944_v3 = vld [vmem:[#allocation14_spill] sm:$0xff] }
 0x1b3   : > { %v1244_v24 = vadd.f32 %v1188_v61, %v1088_v8  ;;  %v4945_v8 = vld [vmem:[#allocation10_spill] sm:$0xff] }
 0x1b4   : > { %v1471_v0 = vpop.f32.mrf.mxu0  ;;  %3135 = vmatmul.msk.bf16.gmra.mxu1 %vm573_vm2, %v1550_v4  ;;  %v1944_v17 = vrot.slane %v4945_v8, 3 }
 0x1b5   : > { %3152 = vmatmul.msk.bf16.gmra.mxu2 %vm573_vm2, %v1548_v37  ;;  %v4201_v28 = vadd.f32 %v1468_v58, %v1244_v24  ;;  %v1943_v37 = vrot.slane %v4944_v3, 2  ;;  %v2519_v58 = vld [vmem:[%s4850_s3 + $0x30] sm:$0xff]  ;;  %v2215_v3 = vrot.slane %v4188_v26, 3 }
 0x1b6   : > { %3171 = vmatmul.msk.bf16.gmra.mxu3 %vm573_vm2, %v1942_v13  ;;  %v1551_v13 = vrot.slane %v4217_v12, 2  ;;  %2581 = vperm.xlu0 %3285, %v2519_v58  }
 0x1b7   : > { %4942 = vst [vmem:[#allocation26_spill] sm:$0xff] %v4201_v28  ;;  %3190 = vmatmul.msk.bf16.gmra.mxu0 %vm573_vm2, %v2214_v1  ;;  %v4947_v1 = vld [vmem:[#allocation44_spill] sm:$0xff] }
 0x1b8   : > { %v1035_v48 = vpop.f32.mrf.mxu2  ;;  %v842_v29 = vadd.f32 %v4149_v47, %v4947_v1  ;;  %v1552_v28 = vsel %vm1539_vm5, %v1549_v45, %v1551_v13  ;;  %v2216_v47 = vsel %vm2207_vm7, %v2213_v10, %v2215_v3 }
 0x1b9   : > { %v1089_v61 = vadd.f32 %v1035_v48, %v840_v30  ;;  %v1191_v32 = vpop.f32.mrf.mxu3  ;;  %v4207_v42 = vpop.f32.mrf.mxu1  ;;  %v1945_v30 = vor.u32 %v1944_v17, %v1943_v37  ;;  %v4949_v37 = vld [vmem:[#allocation28_spill] sm:$0xff] }
 0x1ba   : > { %v845_v26 = vadd.f32 %v4165_v59, %v4949_v37  ;;  %v2518_v37 = vld [vmem:[%s4850_s3 + $0x28] sm:$0xff] }
 0x1bb   : > { %v1245_v16 = vadd.f32 %v1191_v32, %v1089_v61 }
 0x1bc   : > { %v1473_v15 = vpop.f32.mrf.mxu0 }
 0x1bd   : > { %v4214_v24 = vadd.f32 %v1471_v0, %v1245_v16  ;;  %v1946_v16 = vsel %vm1927_vm6, %v1941_v49, %v1945_v30  ;;  %v2517_v49 = vld [vmem:[%s4850_s3 + $0x20] sm:$0xff] }
 0x1be   : > { %2571 = vperm.xlu2 %3287, %v2517_v49  }
 0x1bf   : > { %4946 = vst [vmem:[#allocation23_spill] sm:$0xff] %v4214_v24 }
 0x1c0   : > { %v1037_v48 = vpop.f32.mrf.mxu2 }
 0x1c1   : > { %v1090_v61 = vadd.f32 %v1037_v48, %v842_v29  ;;  %v1193_v32 = vpop.f32.mrf.mxu3  ;;  %v4223_v8 = vpop.f32.mrf.mxu1  ;;  %v4950_v29 = vld [vmem:[#allocation19_spill] sm:$0xff] }
 0x1c2   : > { %v1947_v59 = vrot.slane %v4950_v29, 2  ;;  %v4951_v48 = vld [vmem:[#allocation15_spill] sm:$0xff]  ;;  %v2217_v29 = vrot.slane %v4217_v12, 3 }
 0x1c3   : > { %v1246_v0 = vadd.f32 %v1193_v32, %v1090_v61  ;;  %v1948_v61 = vrot.slane %v4951_v48, 3  ;;  %v4955_v12 = vld [vmem:[#allocation31_spill] sm:$0xff] }
 0x1c4   : > { %v1476_v24 = vpop.f32.mrf.mxu0  ;;  %3136 = vmatmul.msk.bf16.gmra.mxu1 %vm573_vm2, %v1552_v28 }
 0x1c5   : > { %3153 = vmatmul.msk.bf16.gmra.mxu2 %vm573_vm2, %v1550_v4  ;;  %v4230_v17 = vadd.f32 %v1473_v15, %v1246_v0  ;;  %v2520_v4 = vld [vmem:[%s4850_s3 + $0x38] sm:$0xff]  ;;  %v1949_v49 = vor.u32 %v1948_v61, %v1947_v59  ;;  %v850_v61 = vadd.f32 %v4194_v19, %v4955_v12  ;;  %v2523_v19 = vld [vmem:[%s4850_s3 + $0x50] sm:$0xff] }
 0x1c6   : > { %3172 = vmatmul.msk.bf16.gmra.mxu3 %vm573_vm2, %v1946_v16  ;;  %2586 = vperm.xlu1 %3286, %v2520_v4   ;;  %v4249_v16 = vld [vmem:[%s3513_s8 + $0x40] sm:$0xff]  ;;  %v4959_v12 = vld [vmem:[#allocation33_spill] sm:$0xff] }
 0x1c7   : > { %4948 = vst [vmem:[#allocation21_spill] sm:$0xff] %v4230_v17  ;;  %3191 = vmatmul.msk.bf16.gmra.mxu0 %vm573_vm2, %v2216_v47  ;;  %v1553_v47 = vrot.slane %v4249_v16, 2  ;;  %2576 = vperm.xlu2 %3287, %v2518_v37  }
 0x1c8   : > { %v1040_v45 = vpop.f32.mrf.mxu2 }
 0x1c9   : > { %v1091_v10 = vadd.f32 %v1040_v45, %v845_v26  ;;  %v1196_v15 = vpop.f32.mrf.mxu3  ;;  %v4242_v58 = vpop.f32.mrf.mxu1  ;;  %v4953_v26 = vld [vmem:[#allocation29_spill] sm:$0xff] }
 0x1ca   : > { %v847_v45 = vadd.f32 %v4181_v2, %v4953_v26  ;;  %v2218_v2 = vsel %vm2207_vm7, %v2215_v3, %v2217_v29 }
 0x1cb   : > { %v1247_v1 = vadd.f32 %v1196_v15, %v1091_v10 }
 0x1cc   : > { %v1478_v32 = vpop.f32.mrf.mxu0 }
 0x1cd   : > { %v4246_v0 = vadd.f32 %v1476_v24, %v1247_v1  ;;  %v1554_v1 = vsel %vm1539_vm5, %v1551_v13, %v1553_v47 }
 0x1ce   : > { %2601 = vperm.xlu1 %3286, %v2523_v19  }
 0x1cf   : > { %4952 = vst [vmem:[#allocation32_spill] sm:$0xff] %v4246_v0  ;;  %v1950_v0 = vsel %vm1927_vm6, %v1945_v30, %v1949_v49  ;;  %v2522_v30 = vld [vmem:[%s4850_s3 + $0x48] sm:$0xff] }
 0x1d0   : > { %v1042_v4 = vpop.f32.mrf.mxu2  ;;  %2596 = vperm.xlu0 %3285, %v2522_v30  }
 0x1d1   : > { %v1092_v10 = vadd.f32 %v1042_v4, %v847_v45  ;;  %v1198_v15 = vpop.f32.mrf.mxu3  ;;  %v4258_v24 = vpop.f32.mrf.mxu1  ;;  %v4957_v4 = vld [vmem:[#allocation11_spill] sm:$0xff] }
 0x1d3   : > { %v1248_v48 = vadd.f32 %v1198_v15, %v1092_v10 }
 0x1d4   : > { %v1481_v17 = vpop.f32.mrf.mxu0  ;;  %3137 = vmatmul.msk.bf16.gmra.mxu1 %vm573_vm2, %v1554_v1 }
 0x1d5   : > { %3154 = vmatmul.msk.bf16.gmra.mxu2 %vm573_vm2, %v1552_v28  ;;  %v4265_v59 = vadd.f32 %v1478_v32, %v1248_v48  ;;  %v4956_v32 = vld [vmem:[#allocation12_spill] sm:$0xff] }
 0x1d6   : > { %3173 = vmatmul.msk.bf16.gmra.mxu3 %vm573_vm2, %v1950_v0  ;;  %v1951_v45 = vrot.slane %v4956_v32, 2  ;;  %v1952_v0 = vrot.slane %v4957_v4, 3  ;;  %v4284_v48 = vld [vmem:[%s3513_s8 + $0x48] sm:$0xff]  ;;  %v2219_v32 = vrot.slane %v4249_v16, 3  ;;  %v4961_v16 = vld [vmem:[#allocation35_spill] sm:$0xff] }
 0x1d7   : > { %4954 = vst [vmem:[#allocation34_spill] sm:$0xff] %v4265_v59  ;;  %3192 = vmatmul.msk.bf16.gmra.mxu0 %vm573_vm2, %v2218_v2  ;;  %v1555_v2 = vrot.slane %v4284_v48, 2 }
 0x1d8   : > { %v1045_v13 = vpop.f32.mrf.mxu2 }
 0x1d9   : > { %v1093_v37 = vadd.f32 %v1045_v13, %v850_v61  ;;  %v1201_v26 = vpop.f32.mrf.mxu3  ;;  %v4274_v28 = vpop.f32.mrf.mxu1  ;;  %v852_v61 = vadd.f32 %v4207_v42, %v4959_v12  ;;  %v1953_v13 = vor.u32 %v1952_v0, %v1951_v45  ;;  %v1556_v59 = vsel %vm1539_vm5, %v1553_v47, %v1555_v2 }
 0x1da   : > { %v2220_v42 = vsel %vm2207_vm7, %v2217_v29, %v2219_v32  ;;  %v855_v0 = vadd.f32 %v4223_v8, %v4961_v16  ;;  %v2525_v8 = vld [vmem:[%s4850_s3 + $0x60] sm:$0xff]  ;;  %v4965_v16 = vld [vmem:[#allocation37_spill] sm:$0xff] }
 0x1db   : > { %v1249_v3 = vadd.f32 %v1201_v26, %v1093_v37  ;;  %2611 = vperm.xlu0 %3285, %v2525_v8  }
 0x1dc   : > { %v1483_v10 = vpop.f32.mrf.mxu0 }
 0x1dd   : > { %v4281_v15 = vadd.f32 %v1481_v17, %v1249_v3  ;;  %v1954_v3 = vsel %vm1927_vm6, %v1949_v49, %v1953_v13  ;;  %v2521_v49 = vld [vmem:[%s4850_s3 + $0x40] sm:$0xff] }
 0x1de   : > { %2591 = vperm.xlu2 %3287, %v2521_v49  }
 0x1df   : > { %4958 = vst [vmem:[#allocation25_spill] sm:$0xff] %v4281_v15 }
 0x1e0   : > { %v1047_v30 = vpop.f32.mrf.mxu2 }
 0x1e1   : > { %v1094_v37 = vadd.f32 %v1047_v30, %v852_v61  ;;  %v1203_v26 = vpop.f32.mrf.mxu3  ;;  %v4290_v4 = vpop.f32.mrf.mxu1  ;;  %v4963_v30 = vld [vmem:[#allocation13_spill] sm:$0xff] }
 0x1e3   : > { %v1250_v17 = vadd.f32 %v1203_v26, %v1094_v37  ;;  %v1956_v37 = vrot.slane %v4963_v30, 3 }
 0x1e4   : > { %v1486_v15 = vpop.f32.mrf.mxu0  ;;  %3138 = vmatmul.msk.bf16.gmra.mxu1 %vm573_vm2, %v1556_v59 }
 0x1e5   : > { %3155 = vmatmul.msk.bf16.gmra.mxu2 %vm573_vm2, %v1554_v1  ;;  %v4297_v45 = vadd.f32 %v1483_v10, %v1250_v17  ;;  %v4962_v10 = vld [vmem:[#allocation16_spill] sm:$0xff] }
 0x1e6   : > { %3174 = vmatmul.msk.bf16.gmra.mxu3 %vm573_vm2, %v1954_v3  ;;  %v1955_v61 = vrot.slane %v4962_v10, 2  ;;  %v4316_v3 = vld [vmem:[%s3513_s8 + $0x50] sm:$0xff]  ;;  %v2221_v10 = vrot.slane %v4284_v48, 3  ;;  %v4966_v48 = vld [vmem:[#allocation39_spill] sm:$0xff] }
 0x1e7   : > { %4960 = vst [vmem:[#allocation24_spill] sm:$0xff] %v4297_v45  ;;  %3193 = vmatmul.msk.bf16.gmra.mxu0 %vm573_vm2, %v2220_v42  ;;  %v1557_v42 = vrot.slane %v4316_v3, 2 }
 0x1e8   : > { %v1050_v47 = vpop.f32.mrf.mxu2 }
 0x1e9   : > { %v1095_v19 = vadd.f32 %v1050_v47, %v855_v0  ;;  %v1206_v12 = vpop.f32.mrf.mxu3  ;;  %v4306_v1 = vpop.f32.mrf.mxu1  ;;  %v857_v0 = vadd.f32 %v4242_v58, %v4965_v16  ;;  %v1957_v47 = vor.u32 %v1956_v37, %v1955_v61  ;;  %v1558_v45 = vsel %vm1539_vm5, %v1555_v2, %v1557_v42 }
 0x1ea   : > { %v2222_v58 = vsel %vm2207_vm7, %v2219_v32, %v2221_v10  ;;  %v860_v2 = vadd.f32 %v4258_v24, %v4966_v48 }
 0x1eb   : > { %v1251_v29 = vadd.f32 %v1206_v12, %v1095_v19 }
 0x1ec   : > { %v1488_v26 = vpop.f32.mrf.mxu0 }
 0x1ed   : > { %v4313_v17 = vadd.f32 %v1486_v15, %v1251_v29  ;;  %v1958_v29 = vsel %vm1927_vm6, %v1953_v13, %v1957_v47  ;;  %v2526_v13 = vld [vmem:[%s4850_s3 + $0x68] sm:$0xff] }
 0x1ee   : > { %2616 = vperm.xlu1 %3286, %v2526_v13  }
 0x1ef   : > { %4964 = vst [vmem:[#allocation36_spill] sm:$0xff] %v4313_v17 }
 0x1f0   : > { %v1052_v49 = vpop.f32.mrf.mxu2 }
 0x1f1   : > { %v1096_v19 = vadd.f32 %v1052_v49, %v857_v0  ;;  %v1208_v12 = vpop.f32.mrf.mxu3  ;;  %v1643_v30 = vpop.f32.mrf.mxu1  ;;  %v4968_v0 = vld [vmem:[#allocation17_spill] sm:$0xff] }
 0x1f2   : > { %v4324_v15 = vadd.f32 %v1643_v30, %v3943_v44  ;;  %v1960_v49 = vrot.slane %v4968_v0, 3  ;;  %v4350_v30 = vld [vmem:[%s3513_s8 + $0x58] sm:$0xff] }
 0x1f3   : > { %v1252_v20 = vadd.f32 %v1208_v12, %v1096_v19  ;;  %v2524_v19 = vld [vmem:[%s4850_s3 + $0x58] sm:$0xff] }
 0x1f4   : > { %v1491_v17 = vpop.f32.mrf.mxu0  ;;  %3139 = vmatmul.msk.bf16.gmra.mxu1 %vm573_vm2, %v1558_v45  ;;  %2606 = vperm.xlu2 %3287, %v2524_v19  }
 0x1f5   : > { %3156 = vmatmul.msk.bf16.gmra.mxu2 %vm573_vm2, %v1556_v59  ;;  %v4330_v61 = vadd.f32 %v1488_v26, %v1252_v20  ;;  %v4967_v26 = vld [vmem:[#allocation20_spill] sm:$0xff] }
 0x1f6   : > { %3175 = vmatmul.msk.bf16.gmra.mxu3 %vm573_vm2, %v1958_v29  ;;  %v1959_v16 = vrot.slane %v4967_v26, 2  ;;  %v1559_v29 = vrot.slane %v4350_v30, 2 }
 0x1f7   : > { %3194 = vmatmul.msk.bf16.gmra.mxu0 %vm573_vm2, %v2222_v58  ;;  %v4969_v58 = vld [vmem:[#allocation41_spill] sm:$0xff] }
 0x1f8   : > { %v1055_v44 = vpop.f32.mrf.mxu2  ;;  %v1961_v48 = vor.u32 %v1960_v49, %v1959_v16 }
 0x1f9   : > { %v1097_v37 = vadd.f32 %v1055_v44, %v860_v2  ;;  %v1211_v8 = vpop.f32.mrf.mxu3  ;;  %v1645_v59 = vpop.f32.mrf.mxu1 }
 0x1fa   : > { %v4340_v20 = vadd.f32 %v1645_v59, %v3952_v35  ;;  %v862_v35 = vadd.f32 %v4274_v28, %v4969_v58  ;;  %v1560_v59 = vsel %vm1539_vm5, %v1557_v42, %v1559_v29  ;;  %v1963_v58 = vrot.slane %v3728_v52, 2  ;;  %v4971_v52 = vld [vmem:[#allocation45_spill] sm:$0xff] }
 0x1fb   : > { %v1253_v32 = vadd.f32 %v1211_v8, %v1097_v37  ;;  %v2223_v37 = vrot.slane %v4316_v3, 3  ;;  %v4970_v3 = vld [vmem:[#allocation43_spill] sm:$0xff] }
 0x1fc   : > { %v1493_v24 = vpop.f32.mrf.mxu0  ;;  %v865_v42 = vadd.f32 %v4290_v4, %v4970_v3  ;;  %v1964_v4 = vrot.slane %v3675_v36, 3  ;;  %v867_v36 = vadd.f32 %v4306_v1, %v4971_v52  ;;  %v2822_v52 = vld [vmem:[%s4851_s4 + $0x70] sm:$0xff] }
 0x1fd   : > { %v4347_v12 = vadd.f32 %v1491_v17, %v1253_v32  ;;  %v1962_v32 = vsel %vm1927_vm6, %v1957_v47, %v1961_v48  ;;  %v2224_v28 = vsel %vm2207_vm7, %v2221_v10, %v2223_v37  ;;  %v2528_v47 = vld [vmem:[%s4850_s3 + $0x78] sm:$0xff] }
 0x1fe   : > { %2626 = vperm.xlu0 %3285, %v2528_v47  }
 0x200   : > { %v1057_v2 = vpop.f32.mrf.mxu2 }
 0x201   : > { %v1098_v44 = vadd.f32 %v1057_v2, %v862_v35  ;;  %v1213_v13 = vpop.f32.mrf.mxu3  ;;  %v1648_v8 = vpop.f32.mrf.mxu1  ;;  %v2823_v2 = vld [vmem:[%s4851_s4 + $0x78] sm:$0xff] }
 0x202   : > { %v4358_v17 = vadd.f32 %v1648_v8, %v3959_v5  ;;  %v4387_v8 = vld [vmem:[%s3513_s8 + $0x60] sm:$0xff]  ;;  %2825 = vmatpush.msrb.mxu1 %v2823_v2 }
 0x203   : > { %v1254_v26 = vadd.f32 %v1213_v13, %v1098_v44  ;;  %v2529_v44 = vld [vmem:[%s4850_s3 + $0x80] sm:$0xff] }
 0x204   : > { %v1496_v0 = vpop.f32.mrf.mxu0  ;;  %3140 = vmatmul.msk.bf16.gmra.mxu1 %vm573_vm2, %v1560_v59  ;;  %2631 = vperm.xlu1 %3286, %v2529_v44  }
 0x205   : > { %3157 = vmatmul.msk.bf16.gmra.mxu2 %vm573_vm2, %v1558_v45  ;;  %v4364_v16 = vadd.f32 %v1493_v24, %v1254_v26  ;;  %v1965_v26 = vor.u32 %v1964_v4, %v1963_v58  ;;  %v1967_v4 = vrot.slane %v3663_v31, 2  ;;  %2826 = vmatpush.msrb.mxu1 %v2822_v52 }
 0x206   : > { %3176 = vmatmul.msk.bf16.gmra.mxu3 %vm573_vm2, %v1962_v32 }
 0x207   : > { %3195 = vmatmul.msk.bf16.gmra.mxu0 %vm573_vm2, %v2224_v28 }
 0x208   : > { %v1060_v5 = vpop.f32.mrf.mxu2 }
 0x209   : > { %v1099_v49 = vadd.f32 %v1060_v5, %v865_v42  ;;  %v1216_v19 = vpop.f32.mrf.mxu3  ;;  %v1650_v45 = vpop.f32.mrf.mxu1  ;;  %v2225_v42 = vrot.slane %v4350_v30, 3 }
 0x20a   : > { %v4374_v24 = vadd.f32 %v1650_v45, %v3968_v34  ;;  %v1561_v34 = vrot.slane %v4387_v8, 2 }
 0x20b   : > { %v1255_v10 = vadd.f32 %v1216_v19, %v1099_v49  ;;  %v1966_v19 = vsel %vm1927_vm6, %v1961_v48, %v1965_v26  ;;  %v2226_v1 = vsel %vm2207_vm7, %v2223_v37, %v2225_v42 }
 0x20c   : > { %v1498_v35 = vpop.f32.mrf.mxu0  ;;  %v1562_v47 = vsel %vm1539_vm5, %v1559_v29, %v1561_v34 }
 0x20d   : > { %v4384_v13 = vadd.f32 %v1496_v0, %v1255_v10 }
 0x210   : > { %v1062_v32 = vpop.f32.mrf.mxu2 }
 0x211   : > { %v1100_v28 = vadd.f32 %v1062_v32, %v867_v36  ;;  %v1218_v3 = vpop.f32.mrf.mxu3  ;;  %v1653_v5 = vpop.f32.mrf.mxu1  ;;  %v4421_v32 = vld [vmem:[%s3513_s8 + $0x68] sm:$0xff] }
 0x212   : > { %v4395_v49 = vadd.f32 %v1653_v5, %v3975_v25  ;;  %v2527_v25 = vld [vmem:[%s4850_s3 + $0x70] sm:$0xff]  ;;  %v2552_v36 = vpop.permute.xlu0 %2551 }
 0x213   : > { %v1256_v0 = vadd.f32 %v1218_v3, %v1100_v28  ;;  %2621 = vperm.xlu2 %3287, %v2527_v25  }
 0x214   : > { %v2311_v45 = vpop.f32.mrf.mxu0  ;;  %3141 = vmatmul.msk.bf16.gmra.mxu1 %vm573_vm2, %v1562_v47 }
 0x215   : > { %3158 = vmatmul.msk.bf16.gmra.mxu2 %vm573_vm2, %v1560_v59  ;;  %v4401_v10 = vadd.f32 %v1498_v35, %v1256_v0  ;;  %v1968_v35 = vrot.slane %v3648_v6, 3  ;;  %v4427_v6 = vld [vmem:[%s4849_s2] ss:$0 sm:$0xff]  ;;  %v2227_v0 = vrot.slane %v4387_v8, 3  ;;  %v2532_v8 = vld [vmem:[%s4850_s3 + $0x98] sm:$0xff] }
 0x216   : > { %3177 = vmatmul.msk.bf16.gmra.mxu3 %vm573_vm2, %v1966_v19  ;;  %2646 = vperm.xlu1 %3286, %v2532_v8  }
 0x217   : > { %3196 = vmatmul.msk.bf16.gmra.mxu0 %vm573_vm2, %v2226_v1  ;;  %v1969_v31 = vor.u32 %v1968_v35, %v1967_v4 }
 0x218   : > { %v1799_v30 = vpop.f32.mrf.mxu2 }
 0x219   : > { %v1889_v29 = vadd.f32 %v1799_v30, %v4324_v15  ;;  %v2079_v48 = vpop.f32.mrf.mxu3  ;;  %v1655_v58 = vpop.f32.mrf.mxu1  ;;  %v2531_v15 = vld [vmem:[%s4850_s3 + $0x90] sm:$0xff] }
 0x21a   : > { %v4410_v37 = vadd.f32 %v1655_v58, %v3983_v9  ;;  %v1563_v9 = vrot.slane %v4421_v32, 2  ;;  %2641 = vperm.xlu0 %3285, %v2531_v15  }
 0x21b   : > { %v2169_v59 = vadd.f32 %v2079_v48, %v1889_v29  ;;  %v1970_v29 = vsel %vm1927_vm6, %v1965_v26, %v1969_v31 }
 0x21c   : > { %v2313_v44 = vpop.f32.mrf.mxu0 }
 0x21d   : > { %v2401_v2 = vadd.f32 %v2311_v45, %v2169_v59  ;;  %v1564_v45 = vsel %vm1539_vm5, %v1561_v34, %v1563_v9  ;;  %v2557_v59 = vpop.permute.xlu0 %2556 }
 0x21f   : > { %v2441_v30 = vadd.f32 %v4427_v6, %v2401_v2  ;;  %v1971_v2 = vrot.slane %v3561_v23, 2  ;;  %v2535_v23 = vld [vmem:[%s4850_s3 + $0xb0] sm:$0xff] }
 0x220   : > { %v1801_v28 = vpop.f32.mrf.mxu2  ;;  %2661 = vperm.xlu1 %3286, %v2535_v23  }
 0x221   : > { %v1890_v3 = vadd.f32 %v1801_v28, %v4340_v20  ;;  %v2081_v5 = vpop.f32.mrf.mxu3  ;;  %v1658_v19 = vpop.f32.mrf.mxu1  ;;  %v2228_v20 = vsel %vm2207_vm7, %v2225_v42, %v2227_v0  ;;  %v2477_v34 = vmax.f32 %v2441_v30, 0.0  ;;  %v4462_v30 = vld [vmem:[%s3513_s8 + $0x70] sm:$0xff] }
 0x222   : > { %v4434_v25 = vadd.f32 %v1658_v19, %v3989_v56 }
 0x223   : > { %v2170_v1 = vadd.f32 %v2081_v5, %v1890_v3  ;;  %v2729_v52 = vmul.f32 %v2552_v36, %v2477_v34  ;;  %v2534_v5 = vld [vmem:[%s4850_s3 + $0xa8] sm:$0xff]  ;;  %v2562_v36 = vpop.permute.xlu1 %2561 }
 0x224   : > { %v2316_v58 = vpop.f32.mrf.mxu0  ;;  %3142 = vmatmul.msk.bf16.gmra.mxu1 %vm573_vm2, %v1564_v45  ;;  %2656 = vperm.xlu0 %3285, %v2534_v5  }
 0x225   : > { %v2402_v48 = vadd.f32 %v2313_v44, %v2170_v1  ;;  %3159 = vmatmul.msk.bf16.gmra.mxu2 %vm573_vm2, %v1562_v47  ;;  %v1972_v44 = vrot.slane %v3558_v22, 3  ;;  %v2530_v22 = vld [vmem:[%s4850_s3 + $0x88] sm:$0xff] }
 0x226   : > { %3178 = vmatmul.msk.bf16.gmra.mxu3 %vm573_vm2, %v1970_v29  ;;  %2636 = vperm.xlu2 %3287, %v2530_v22  }
 0x227   : > { %v2442_v56 = vadd.f32 %v4427_v6, %v2402_v48  ;;  %3197 = vmatmul.msk.bf16.gmra.mxu0 %vm573_vm2, %v2228_v20  ;;  %v4466_v48 = vor.u32 %v1972_v44, %v1971_v2 }
 0x228   : > { %v1804_v26 = vpop.f32.mrf.mxu2 }
 0x229   : > { %v1891_v4 = vadd.f32 %v1804_v26, %v4358_v17  ;;  %v2084_v35 = vpop.f32.mrf.mxu3  ;;  %v2478_v47 = vmax.f32 %v2442_v56, 0.0  ;;  %v1660_v42 = vpop.f32.mrf.mxu1  ;;  %v2229_v56 = vrot.slane %v4421_v32, 3 }
 0x22a   : > { %v4450_v3 = vadd.f32 %v1660_v42, %v3997_v55  ;;  %v1565_v55 = vrot.slane %v4462_v30, 2  ;;  %v1974_v42 = vsel %vm1927_vm6, %v1969_v31, %v4466_v48  ;;  %v2538_v31 = vld [vmem:[%s4850_s3 + $0xc8] sm:$0xff] }
 0x22b   : > { %v2171_v15 = vadd.f32 %v2084_v35, %v1891_v4  ;;  %v2730_v28 = vmul.f32 %v2557_v59, %v2478_v47  ;;  %2676 = vperm.xlu1 %3286, %v2538_v31  }
 0x22c   : > { %v2318_v1 = vpop.f32.mrf.mxu0  ;;  %v1566_v59 = vsel %vm1539_vm5, %v1563_v9, %v1565_v55  ;;  %v2230_v9 = vsel %vm2207_vm7, %v2227_v0, %v2229_v56 }
 0x22d   : > { %v2403_v19 = vadd.f32 %v2316_v58, %v2171_v15  ;;  %v2765_v17 = vadd.f32 %v2730_v28, %v2729_v52  ;;  %v2567_v28 = vpop.permute.xlu1 %2566 }
 0x22f   : > { %v2443_v29 = vadd.f32 %v4427_v6, %v2403_v19 }
 0x230   : > { %v1806_v58 = vpop.f32.mrf.mxu2 }
 0x231   : > { %v1892_v20 = vadd.f32 %v1806_v58, %v4374_v24  ;;  %v2086_v8 = vpop.f32.mrf.mxu3  ;;  %v2479_v34 = vmax.f32 %v2443_v29, 0.0  ;;  %v1663_v26 = vpop.f32.mrf.mxu1  ;;  %v2537_v24 = vld [vmem:[%s4850_s3 + $0xc0] sm:$0xff]  ;;  %v1976_v29 = vrot.slane %v3567_v27, 3  ;;  %v2540_v58 = vld [vmem:[%s4850_s3 + $0xd8] sm:$0xff] }
 0x232   : > { %v4474_v47 = vadd.f32 %v1663_v26, %v4003_v33  ;;  %v2821_v33 = vld [vmem:[%s4851_s4 + $0x68] sm:$0xff]  ;;  %2671 = vperm.xlu0 %3285, %v2537_v24   ;;  %v2572_v26 = vpop.permute.xlu2 %2571 }
 0x233   : > { %v2172_v4 = vadd.f32 %v2086_v8, %v1892_v20  ;;  %v2731_v35 = vmul.f32 %v2562_v36, %v2479_v34  ;;  %2827 = vmatpush.msrb.mxu1 %v2821_v33  ;;  %v2541_v34 = vld [vmem:[%s4850_s3 + $0xe0] sm:$0xff] }
 0x234   : > { %v2321_v52 = vpop.f32.mrf.mxu0  ;;  %3143 = vmatmul.msk.bf16.gmra.mxu1 %vm573_vm2, %v1566_v59  ;;  %2691 = vperm.xlu1 %3286, %v2541_v34   ;;  %v1980_v34 = vrot.slane %v3625_v54, 3 }
 0x235   : > { %v2404_v2 = vadd.f32 %v2318_v1, %v2172_v4  ;;  %v2766_v44 = vadd.f32 %v2765_v17, %v2731_v35  ;;  %3160 = vmatmul.msk.bf16.gmra.mxu2 %vm573_vm2, %v1564_v45  ;;  %v1975_v1 = vrot.slane %v3622_v53, 2  ;;  %v2533_v53 = vld [vmem:[%s4850_s3 + $0xa0] sm:$0xff] }
 0x236   : > { %3179 = vmatmul.msk.bf16.gmra.mxu3 %vm573_vm2, %v1974_v42  ;;  %2651 = vperm.xlu2 %3287, %v2533_v53   ;;  %v2546_v53 = vld [vmem:[%s4850_s3 + $0x108] sm:$0xff] }
 0x237   : > { %v2444_v15 = vadd.f32 %v4427_v6, %v2404_v2  ;;  %3198 = vmatmul.msk.bf16.gmra.mxu0 %vm573_vm2, %v2230_v9  ;;  %v4515_v35 = vor.u32 %v1976_v29, %v1975_v1 }
 0x238   : > { %v1809_v45 = vpop.f32.mrf.mxu2 }
 0x239   : > { %v1893_v0 = vadd.f32 %v1809_v45, %v4395_v49  ;;  %v2089_v5 = vpop.f32.mrf.mxu3  ;;  %v2480_v19 = vmax.f32 %v2444_v15, 0.0  ;;  %v1665_v17 = vpop.f32.mrf.mxu1 }
 0x23a   : > { %v4498_v36 = vadd.f32 %v1665_v17, %v4011_v21  ;;  %v4511_v21 = vld [vmem:[%s3513_s8 + $0x78] sm:$0xff]  ;;  %2686 = vperm.xlu0 %3285, %v2540_v58   ;;  %v1979_v58 = vrot.slane %v3679_v38, 2 }
 0x23b   : > { %v2173_v23 = vadd.f32 %v2089_v5, %v1893_v0  ;;  %v2732_v22 = vmul.f32 %v2567_v28, %v2480_v19  ;;  %v1567_v27 = vrot.slane %v4511_v21, 2  ;;  %v2543_v28 = vld [vmem:[%s4850_s3 + $0xf0] sm:$0xff] }
 0x23c   : > { %v2323_v49 = vpop.f32.mrf.mxu0 }
 0x23d   : > { %v2405_v20 = vadd.f32 %v2321_v52, %v2173_v23  ;;  %v2767_v8 = vadd.f32 %v2766_v44, %v2732_v22  ;;  %v2231_v52 = vrot.slane %v4462_v30, 3  ;;  %v1568_v33 = vsel %vm1539_vm5, %v1565_v55, %v1567_v27  ;;  %v2820_v55 = vld [vmem:[%s4851_s4 + $0x60] sm:$0xff]  ;;  %v2542_v30 = vld [vmem:[%s4850_s3 + $0xe8] sm:$0xff] }
 0x23e   : > { %2828 = vmatpush.msrb.mxu1 %v2820_v55 }
 0x23f   : > { %v2445_v4 = vadd.f32 %v4427_v6, %v2405_v20 }
 0x240   : > { %v1811_v42 = vpop.f32.mrf.mxu2 }
 0x241   : > { %v1894_v24 = vadd.f32 %v1811_v42, %v4410_v37  ;;  %v2091_v2 = vpop.f32.mrf.mxu3  ;;  %v2481_v44 = vmax.f32 %v2445_v4, 0.0  ;;  %v1668_v9 = vpop.f32.mrf.mxu1  ;;  %v1978_v37 = vsel %vm1927_vm6, %v4466_v48, %v4515_v35  ;;  %v2544_v48 = vld [vmem:[%s4850_s3 + $0xf8] sm:$0xff]  ;;  %v2547_v42 = vld [vmem:[%s4850_s3 + $0x110] sm:$0xff] }
 0x242   : > { %v4525_v45 = vadd.f32 %v1668_v9, %v4020_v51  ;;  %v2232_v51 = vsel %vm2207_vm7, %v2229_v56, %v2231_v52  ;;  %2701 = vperm.xlu0 %3285, %v2543_v28   ;;  %2706 = vperm.xlu1 %3286, %v2544_v48   ;;  %v2536_v56 = vld [vmem:[%s4850_s3 + $0xb8] sm:$0xff]  ;;  %v2582_v9 = vpop.permute.xlu0 %2581  ;;  %v2233_v28 = vrot.slane %v4511_v21, 3 }
 0x243   : > { %v2174_v31 = vadd.f32 %v2091_v2, %v1894_v24  ;;  %v2733_v15 = vmul.f32 %v2572_v26, %v2481_v44  ;;  %2666 = vperm.xlu2 %3287, %v2536_v56   ;;  %v4565_v24 = vld [vmem:[%s3513_s8 + $0x80] sm:$0xff]  ;;  %v1981_v2 = vor.u32 %v1980_v34, %v1979_v58  ;;  %v2819_v21 = vld [vmem:[%s4851_s4 + $0x58] sm:$0xff] }
 0x244   : > { %v2326_v19 = vpop.f32.mrf.mxu0  ;;  %3144 = vmatmul.msk.bf16.gmra.mxu1 %vm573_vm2, %v1568_v33  ;;  %v1569_v38 = vrot.slane %v4565_v24, 2 }
 0x245   : > { %v2406_v0 = vadd.f32 %v2323_v49, %v2174_v31  ;;  %v2768_v5 = vadd.f32 %v2767_v8, %v2733_v15  ;;  %3161 = vmatmul.msk.bf16.gmra.mxu2 %vm573_vm2, %v1566_v59  ;;  %v2577_v59 = vpop.permute.xlu2 %2576  ;;  %v1982_v55 = vsel %vm1927_vm6, %v4515_v35, %v1981_v2  ;;  %2829 = vmatpush.msrb.mxu1 %v2819_v21 }
 0x246   : > { %3180 = vmatmul.msk.bf16.gmra.mxu3 %vm573_vm2, %v1978_v37 }
 0x247   : > { %v2446_v17 = vadd.f32 %v4427_v6, %v2406_v0  ;;  %3199 = vmatmul.msk.bf16.gmra.mxu0 %vm573_vm2, %v2232_v51 }
 0x248   : > { %v1814_v32 = vpop.f32.mrf.mxu2 }
 0x249   : > { %v1895_v1 = vadd.f32 %v1814_v32, %v4434_v25  ;;  %v2094_v23 = vpop.f32.mrf.mxu3  ;;  %v2482_v22 = vmax.f32 %v2446_v17, 0.0  ;;  %v1670_v29 = vpop.f32.mrf.mxu1 }
 0x24a   : > { %v4555_v49 = vadd.f32 %v1670_v29, %v4031_v62  ;;  %v2539_v62 = vld [vmem:[%s4850_s3 + $0xd0] sm:$0xff]  ;;  %2716 = vperm.xlu0 %3285, %v2546_v53   ;;  %2721 = vperm.xlu1 %3286, %v2547_v42  }
 0x24b   : > { %v2175_v20 = vadd.f32 %v2094_v23, %v1895_v1  ;;  %v2734_v8 = vmul.f32 %v2577_v59, %v2482_v22  ;;  %2681 = vperm.xlu2 %3287, %v2539_v62   ;;  %v2587_v59 = vpop.permute.xlu1 %2586  ;;  %v1983_v23 = vrot.slane %v3731_v57, 2 }
 0x24c   : > { %v2328_v25 = vpop.f32.mrf.mxu0 }
 0x24d   : > { %v2407_v26 = vadd.f32 %v2326_v19, %v2175_v20  ;;  %v2769_v4 = vadd.f32 %v2768_v5, %v2734_v8  ;;  %v1570_v5 = vsel %vm1539_vm5, %v1567_v27, %v1569_v38  ;;  %v1984_v20 = vrot.slane %v3682_v39, 3  ;;  %v2592_v62 = vpop.permute.xlu2 %2591 }
 0x24f   : > { %v2447_v54 = vadd.f32 %v4427_v6, %v2407_v26  ;;  %v4602_v26 = vld [vmem:[%s3513_s8 + $0x88] sm:$0xff] }
 0x250   : > { %v1816_v44 = vpop.f32.mrf.mxu2 }
 0x251   : > { %v1896_v31 = vadd.f32 %v1816_v44, %v4450_v3  ;;  %v2096_v15 = vpop.f32.mrf.mxu3  ;;  %v2483_v37 = vmax.f32 %v2447_v54, 0.0  ;;  %v4574_v0 = vpop.f32.mrf.mxu1  ;;  %v2234_v3 = vsel %vm2207_vm7, %v2231_v52, %v2233_v28  ;;  %v2235_v44 = vrot.slane %v4565_v24, 3 }
 0x253   : > { %v2176_v19 = vadd.f32 %v2096_v15, %v1896_v31  ;;  %v2735_v51 = vmul.f32 %v2582_v9, %v2483_v37  ;;  %2696 = vperm.xlu2 %3287, %v2542_v30  }
 0x254   : > { %v2331_v32 = vpop.f32.mrf.mxu0  ;;  %3145 = vmatmul.msk.bf16.gmra.mxu1 %vm573_vm2, %v1570_v5 }
 0x255   : > { %v2408_v48 = vadd.f32 %v2328_v25, %v2176_v19  ;;  %v2770_v17 = vadd.f32 %v2769_v4, %v2735_v51  ;;  %3162 = vmatmul.msk.bf16.gmra.mxu2 %vm573_vm2, %v1568_v33  ;;  %v2545_v4 = vld [vmem:[%s4850_s3 + $0x100] sm:$0xff]  ;;  %v1985_v25 = vor.u32 %v1984_v20, %v1983_v23  ;;  %v4635_v23 = vld [vmem:[%s3513_s8 + $0x90] sm:$0xff]  }
 0x256   : > { %3181 = vmatmul.msk.bf16.gmra.mxu3 %vm573_vm2, %v1982_v55 }
 0x257   : > { %v2448_v27 = vadd.f32 %v4427_v6, %v2408_v48  ;;  %3200 = vmatmul.msk.bf16.gmra.mxu0 %vm573_vm2, %v2234_v3  ;;  %v1986_v51 = vsel %vm1927_vm6, %v1981_v2, %v1985_v25  ;;  %v2818_v2 = vld [vmem:[%s4851_s4 + $0x50] sm:$0xff] }
 0x258   : > { %v1819_v35 = vpop.f32.mrf.mxu2  ;;  %2830 = vmatpush.msrb.mxu1 %v2818_v2  ;;  %v2817_v2 = vld [vmem:[%s4851_s4 + $0x48] sm:$0xff] }
 0x259   : > { %v1897_v52 = vadd.f32 %v1819_v35, %v4474_v47  ;;  %v2099_v33 = vpop.f32.mrf.mxu3  ;;  %v2484_v56 = vmax.f32 %v2448_v27, 0.0  ;;  %v1675_v1 = vpop.f32.mrf.mxu1  ;;  %v1571_v47 = vrot.slane %v4602_v26, 2  ;;  %v1987_v27 = vrot.slane %v3774_v7, 2 }
 0x25a   : > { %v4598_v58 = vadd.f32 %v1675_v1, %v4054_v18  ;;  %v2602_v7 = vpop.permute.xlu1 %2601  ;;  %2831 = vmatpush.msrb.mxu1 %v2817_v2 }
 0x25b   : > { %v2177_v22 = vadd.f32 %v2099_v33, %v1897_v52  ;;  %v2736_v29 = vmul.f32 %v2587_v59, %v2484_v56  ;;  %2711 = vperm.xlu2 %3287, %v2545_v4   ;;  %v1572_v31 = vsel %vm1539_vm5, %v1569_v38, %v1571_v47  ;;  %v1988_v52 = vrot.slane %v3734_v60, 3 }
 0x25c   : > { %v2333_v53 = vpop.f32.mrf.mxu0 }
 0x25d   : > { %v2409_v8 = vadd.f32 %v2331_v32, %v2177_v22  ;;  %v2771_v34 = vadd.f32 %v2770_v17, %v2736_v29  ;;  %v2548_v32 = vld [vmem:[%s4850_s3 + $0x118] sm:$0xff]  ;;  %v1989_v29 = vor.u32 %v1988_v52, %v1987_v27 }
 0x25f   : > { %v2449_v57 = vadd.f32 %v4427_v6, %v2409_v8 }
 0x260   : > { %v1821_v42 = vpop.f32.mrf.mxu2 }
 0x261   : > { %v1898_v18 = vadd.f32 %v1821_v42, %v4498_v36  ;;  %v2101_v54 = vpop.f32.mrf.mxu3  ;;  %v2485_v39 = vmax.f32 %v2449_v57, 0.0  ;;  %v1678_v9 = vpop.f32.mrf.mxu1  ;;  %v2236_v36 = vsel %vm2207_vm7, %v2233_v28, %v2235_v44 }
 0x262   : > { %v4613_v19 = vadd.f32 %v1678_v9, %v4067_v40  ;;  %v2597_v40 = vpop.permute.xlu0 %2596 }
 0x263   : > { %v2178_v15 = vadd.f32 %v2101_v54, %v1898_v18  ;;  %v2737_v37 = vmul.f32 %v2592_v62, %v2485_v39  ;;  %2726 = vperm.xlu2 %3287, %v2548_v32   ;;  %v1990_v18 = vsel %vm1927_vm6, %v1985_v25, %v1989_v29  ;;  %v2607_v25 = vpop.permute.xlu2 %2606  ;;  %v1575_v32 = vrot.slane %v4083_v41, 2 }
 0x264   : > { %v2336_v17 = vpop.f32.mrf.mxu0  ;;  %3146 = vmatmul.msk.bf16.gmra.mxu1 %vm573_vm2, %v1572_v31 }
 0x265   : > { %v2410_v55 = vadd.f32 %v2333_v53, %v2178_v15  ;;  %v2772_v48 = vadd.f32 %v2771_v34, %v2737_v37  ;;  %3163 = vmatmul.msk.bf16.gmra.mxu2 %vm573_vm2, %v1570_v5  ;;  %v2237_v53 = vrot.slane %v4602_v26, 3  ;;  %v1745_v26 = vadd.f32 %v4574_v0, %v4038_v46 }
 0x266   : > { %3182 = vmatmul.msk.bf16.gmra.mxu3 %vm573_vm2, %v1986_v51  ;;  %v4973_v46 = vshll.u32 %v4922_v43, 16 }
 0x267   : > { %v2450_v24 = vadd.f32 %v4427_v6, %v2410_v55  ;;  %3201 = vmatmul.msk.bf16.gmra.mxu0 %vm573_vm2, %v2236_v36 }
 0x268   : > { %v1824_v38 = vpop.f32.mrf.mxu2  ;;  %v1992_v0 = vrot.slane %v4973_v46, 3 }
 0x269   : > { %v1899_v5 = vadd.f32 %v1824_v38, %v4525_v45  ;;  %v2104_v28 = vpop.f32.mrf.mxu3  ;;  %v2486_v3 = vmax.f32 %v2450_v24, 0.0  ;;  %v1680_v21 = vpop.f32.mrf.mxu1  ;;  %v4638_v45 = vrot.slane %v4635_v23, 2 }
 0x26a   : > { %v4631_v30 = vadd.f32 %v1680_v21, %v4085_v50  ;;  %v2612_v21 = vpop.permute.xlu0 %2611 }
 0x26b   : > { %v2179_v35 = vadd.f32 %v2104_v28, %v1899_v5  ;;  %v2738_v59 = vmul.f32 %v2597_v40, %v2486_v3  ;;  %v1574_v4 = vsel %vm1539_vm5, %v1571_v47, %v4638_v45  ;;  %v1576_v52 = vsel %vm1539_vm5, %v4638_v45, %v1575_v32 }
 0x26c   : > { %v2338_v1 = vpop.f32.mrf.mxu0 }
 0x26d   : > { %v2411_v33 = vadd.f32 %v2336_v17, %v2179_v35  ;;  %v2773_v56 = vadd.f32 %v2772_v48, %v2738_v59  ;;  %v4972_v48 = vshrl.u32 %v4922_v43, 16  ;;  %v2239_v35 = vrot.slane %v4635_v23, 3  ;;  %v4682_v23 = vld [vmem:[%s3513_s8 + $0x98] sm:$0xff]  }
 0x26f   : > { %v2451_v22 = vadd.f32 %v4427_v6, %v2411_v33 }
 0x270   : > { %v1826_v20 = vpop.f32.mrf.mxu2 }
 0x271   : > { %v1900_v8 = vadd.f32 %v1826_v20, %v4555_v49  ;;  %v2106_v34 = vpop.f32.mrf.mxu3  ;;  %v2487_v50 = vmax.f32 %v2451_v22, 0.0  ;;  %v1683_v60 = vpop.f32.mrf.mxu1  ;;  %v2238_v49 = vsel %vm2207_vm7, %v2235_v44, %v2237_v53 }
 0x272   : > { %v4646_v62 = vadd.f32 %v1683_v60, %v4095_v14 }
 0x273   : > { %v2180_v57 = vadd.f32 %v2106_v34, %v1900_v8  ;;  %v2739_v42 = vmul.f32 %v2602_v7, %v2487_v50  ;;  %v1996_v8 = vshrl.u32 %v4682_v23, 16  ;;  %v2617_v50 = vpop.permute.xlu1 %2616 }
 0x274   : > { %v2341_v9 = vpop.f32.mrf.mxu0  ;;  %3147 = vmatmul.msk.bf16.gmra.mxu1 %vm573_vm2, %v1574_v4 }
 0x275   : > { %v2412_v54 = vadd.f32 %v2338_v1, %v2180_v57  ;;  %v2774_v39 = vadd.f32 %v2773_v56, %v2739_v42  ;;  %3164 = vmatmul.msk.bf16.gmra.mxu2 %vm573_vm2, %v1572_v31  ;;  %v1991_v31 = vrot.slane %v4972_v48, 2  ;;  %v1998_v42 = vrot.slane %v1996_v8, 2  ;;  %v4976_v8 = vld [vmem:[#allocation22_spill] sm:$0xff] }
 0x276   : > { %3183 = vmatmul.msk.bf16.gmra.mxu3 %vm573_vm2, %v1990_v18 }
 0x277   : > { %v2452_v47 = vadd.f32 %v4427_v6, %v2412_v54  ;;  %3202 = vmatmul.msk.bf16.gmra.mxu0 %vm573_vm2, %v2238_v49  ;;  %v1993_v28 = vor.u32 %v1992_v0, %v1991_v31  ;;  %v2622_v31 = vpop.permute.xlu2 %2621  ;;  %v2241_v0 = vrot.slane %v4682_v23, 3 }
 0x278   : > { %v1829_v14 = vpop.f32.mrf.mxu2 }
 0x279   : > { %v1901_v15 = vadd.f32 %v1829_v14, %v1745_v26  ;;  %v2109_v37 = vpop.f32.mrf.mxu3  ;;  %v2488_v51 = vmax.f32 %v2452_v47, 0.0  ;;  %v1685_v55 = vpop.f32.mrf.mxu1  ;;  %v1994_v1 = vsel %vm1927_vm6, %v1989_v29, %v1993_v28  ;;  %v1999_v29 = vshll.u32 %v4682_v23, 16  ;;  %v327_v26 = vld [vmem:[%s3513_s8 + $0xa0] sm:$0xf] }
 0x27a   : > { %v4660_v36 = vadd.f32 %v1685_v55, %v4111_v11 }
 0x27b   : > { %v2181_v17 = vadd.f32 %v2109_v37, %v1901_v15  ;;  %v2740_v44 = vmul.f32 %v2607_v25, %v2488_v51  ;;  %v2001_v49 = vrot.slane %v1999_v29, 3  ;;  %v2816_v15 = vld [vmem:[%s4851_s4 + $0x40] sm:$0xff]  ;;  %v1774_v37 = vunpack.c.l.b16 %v327_v26 }
 0x27c   : > { %v2343_v40 = vpop.f32.mrf.mxu0  ;;  %2832 = vmatpush.msrb.mxu1 %v2816_v15 }
 0x27d   : > { %v2413_v24 = vadd.f32 %v2341_v9, %v2181_v17  ;;  %v2775_v38 = vadd.f32 %v2774_v39, %v2740_v44  ;;  %v4974_v39 = vld [vmem:[#allocation27_spill] sm:$0xff]  ;;  %v2002_v55 = vor.u32 %v2001_v49, %v1998_v42  ;;  %v2632_v42 = vpop.permute.xlu1 %2631 }
 0x27f   : > { %v2453_v5 = vadd.f32 %v4427_v6, %v2413_v24 }
 0x280   : > { %v1831_v3 = vpop.f32.mrf.mxu2 }
 0x281   : > { %v1902_v11 = vadd.f32 %v1831_v3, %v4598_v58  ;;  %v2111_v27 = vpop.f32.mrf.mxu3  ;;  %v2489_v43 = vmax.f32 %v2453_v5, 0.0  ;;  %v1688_v59 = vpop.f32.mrf.mxu1  ;;  %v2240_v58 = vsel %vm2207_vm7, %v2237_v53, %v2239_v35  ;;  %v4975_v5 = vld [vmem:[#allocation30_spill] sm:$0xff] }
 0x282   : > { %v4674_v41 = vadd.f32 %v1688_v59, %v4126_v63 }
 0x283   : > { %v2182_v33 = vadd.f32 %v2111_v27, %v1902_v11  ;;  %v2741_v56 = vmul.f32 %v2612_v21, %v2489_v43  ;;  %v2003_v21 = vsel %vm1927_vm6, %v1993_v28, %v2002_v55 }
 0x284   : > { %v2346_v7 = vpop.f32.mrf.mxu0  ;;  %3148 = vmatmul.msk.bf16.gmra.mxu1 %vm573_vm2, %v1576_v52 }
 0x285   : > { %v2414_v22 = vadd.f32 %v2343_v40, %v2182_v33  ;;  %v2776_v20 = vadd.f32 %v2775_v38, %v2741_v56  ;;  %3165 = vmatmul.msk.bf16.gmra.mxu2 %vm573_vm2, %v1574_v4  ;;  %v1776_v40 = vpack.c.b16 %v1774_v37, %v1774_v37  ;;  %v2627_v56 = vpop.permute.xlu0 %2626 }
 0x286   : > { %3184 = vmatmul.msk.bf16.gmra.mxu3 %vm573_vm2, %v1994_v1 }
 0x287   : > { %v2454_v63 = vadd.f32 %v4427_v6, %v2414_v22  ;;  %3203 = vmatmul.msk.bf16.gmra.mxu0 %vm573_vm2, %v2240_v58  ;;  %v2005_v59 = vshrl.u32 %v1776_v40, 16  ;;  %v2008_v52 = vshll.u32 %v1776_v40, 16 }
 0x288   : > { %v1834_v34 = vpop.f32.mrf.mxu2 }
 0x289   : > { %v1903_v60 = vadd.f32 %v1834_v34, %v4613_v19  ;;  %v2114_v4 = vpop.f32.mrf.mxu3  ;;  %v2490_v57 = vmax.f32 %v2454_v63, 0.0  ;;  %v1690_v53 = vpop.f32.mrf.mxu1  ;;  %v1777_v19 = vrot.slane %v4682_v23, 2  ;;  %v2010_v63 = vrot.slane %v2008_v52, 3 }
 0x28a   : > { %v4690_v9 = vadd.f32 %v1690_v53, %v4974_v39  ;;  %v2243_v39 = vrot.slane %v1776_v40, 3 }
 0x28b   : > { %v2183_v18 = vadd.f32 %v2114_v4, %v1903_v60  ;;  %v2742_v54 = vmul.f32 %v2617_v50, %v2490_v57  ;;  %v1778_v38 = vsel %vm1539_vm5, %v4638_v45, %v1777_v19  ;;  %v1779_v60 = vrot.slane %v1776_v40, 2 }
 0x28c   : > { %v2348_v25 = vpop.f32.mrf.mxu0 }
 0x28d   : > { %v2415_v47 = vadd.f32 %v2346_v7, %v2183_v18  ;;  %v2777_v14 = vadd.f32 %v2776_v20, %v2742_v54  ;;  %v2007_v7 = vrot.slane %v2005_v59, 2  ;;  %v1780_v26 = vsel %vm1539_vm5, %v1777_v19, %v1779_v60  ;;  %v2642_v59 = vpop.permute.xlu0 %2641 }
 0x28f   : > { %v2455_v51 = vadd.f32 %v4427_v6, %v2415_v47  ;;  %v2011_v57 = vor.u32 %v2010_v63, %v2007_v7 }
 0x290   : > { %v1836_v48 = vpop.f32.mrf.mxu2 }
 0x291   : > { %v1904_v17 = vadd.f32 %v1836_v48, %v4631_v30  ;;  %v2116_v44 = vpop.f32.mrf.mxu3  ;;  %v2491_v46 = vmax.f32 %v2455_v51, 0.0  ;;  %v1693_v24 = vpop.f32.mrf.mxu1  ;;  %v2242_v30 = vsel %vm2207_vm7, %v2239_v35, %v2241_v0  ;;  %v2012_v37 = vsel %vm1927_vm6, %v2002_v55, %v2011_v57 }
 0x292   : > { %v4703_v3 = vadd.f32 %v1693_v24, %v4975_v5  ;;  %v2637_v55 = vpop.permute.xlu2 %2636 }
 0x293   : > { %v2184_v2 = vadd.f32 %v2116_v44, %v1904_v17  ;;  %v2743_v32 = vmul.f32 %v2622_v31, %v2491_v46  ;;  %v2815_v17 = vld [vmem:[%s4851_s4 + $0x38] sm:$0xff] }
 0x294   : > { %v2351_v43 = vpop.f32.mrf.mxu0  ;;  %2833 = vmatpush.msrb.mxu1 %v2815_v17 }
 0x295   : > { %v2416_v11 = vadd.f32 %v2348_v25, %v2184_v2  ;;  %v2778_v27 = vadd.f32 %v2777_v14, %v2743_v32  ;;  %3166 = vmatmul.msk.bf16.gmra.mxu2 %vm573_vm2, %v1778_v38  ;;  %v4977_v25 = vld [vmem:[#allocation18_spill] sm:$0xff] }
 0x296   : > { %3185 = vmatmul.msk.bf16.gmra.mxu3 %vm573_vm2, %v2003_v21  ;;  %v4978_v32 = vld [vmem:[#allocation26_spill] sm:$0xff] }
 0x297   : > { %v2456_v45 = vadd.f32 %v4427_v6, %v2416_v11  ;;  %3204 = vmatmul.msk.bf16.gmra.mxu0 %vm573_vm2, %v2242_v30 }
 0x298   : > { %v1839_v33 = vpop.f32.mrf.mxu2 }
 0x299   : > { %v1905_v1 = vadd.f32 %v1839_v33, %v4646_v62  ;;  %v2119_v28 = vpop.f32.mrf.mxu3  ;;  %v2492_v22 = vmax.f32 %v2456_v45, 0.0  ;;  %v1695_v20 = vpop.f32.mrf.mxu1 }
 0x29a   : > { %v4713_v35 = vadd.f32 %v1695_v20, %v4976_v8 }
 0x29b   : > { %v2185_v58 = vadd.f32 %v2119_v28, %v1905_v1  ;;  %v2744_v23 = vmul.f32 %v2627_v56, %v2492_v22  ;;  %v4979_v28 = vld [vmem:[#allocation23_spill] sm:$0xff] }
 0x29c   : > { %v2353_v50 = vpop.f32.mrf.mxu0 }
 0x29d   : > { %v2417_v29 = vadd.f32 %v2351_v43, %v2185_v58  ;;  %v2779_v34 = vadd.f32 %v2778_v27, %v2744_v23  ;;  %v2814_v23 = vld [vmem:[%s4851_s4 + $0x30] sm:$0xff] }
 0x29e   : > { %2834 = vmatpush.msrb.mxu1 %v2814_v23 }
 0x29f   : > { %v2457_v4 = vadd.f32 %v4427_v6, %v2417_v29 }
 0x2a0   : > { %v1841_v53 = vpop.f32.mrf.mxu2 }
 0x2a1   : > { %v1906_v62 = vadd.f32 %v1841_v53, %v4660_v36  ;;  %v2121_v18 = vpop.f32.mrf.mxu3  ;;  %v2493_v54 = vmax.f32 %v2457_v4, 0.0  ;;  %v1698_v49 = vpop.f32.mrf.mxu1  ;;  %v2244_v36 = vsel %vm2207_vm7, %v2241_v0, %v2243_v39 }
 0x2a2   : > { %v4719_v15 = vadd.f32 %v1698_v49, %v4977_v25 }
 0x2a3   : > { %v2186_v47 = vadd.f32 %v2121_v18, %v1906_v62  ;;  %v2745_v14 = vmul.f32 %v2632_v42, %v2493_v54 }
 0x2a4   : > { %v2356_v31 = vpop.f32.mrf.mxu0 }
 0x2a5   : > { %v2418_v51 = vadd.f32 %v2353_v50, %v2186_v47  ;;  %v2780_v48 = vadd.f32 %v2779_v34, %v2745_v14  ;;  %3167 = vmatmul.msk.bf16.gmra.mxu2 %vm573_vm2, %v1780_v26  ;;  %v2647_v50 = vpop.permute.xlu1 %2646  ;;  %v2652_v26 = vpop.permute.xlu2 %2651 }
 0x2a6   : > { %3186 = vmatmul.msk.bf16.gmra.mxu3 %vm573_vm2, %v2012_v37 }
 0x2a7   : > { %v2458_v19 = vadd.f32 %v4427_v6, %v2418_v51  ;;  %3205 = vmatmul.msk.bf16.gmra.mxu0 %vm573_vm2, %v2244_v36 }
 0x2a8   : > { %v1844_v44 = vpop.f32.mrf.mxu2 }
 0x2a9   : > { %v1907_v46 = vadd.f32 %v1844_v44, %v4674_v41  ;;  %v2124_v24 = vpop.f32.mrf.mxu3  ;;  %v2494_v38 = vmax.f32 %v2458_v19, 0.0  ;;  %v1700_v40 = vpop.f32.mrf.mxu1 }
 0x2aa   : > { %v1756_v5 = vadd.f32 %v1700_v40, %v4978_v32  ;;  %v2657_v44 = vpop.permute.xlu0 %2656  ;;  %v2813_v40 = vld [vmem:[%s4851_s4 + $0x28] sm:$0xff] }
 0x2ab   : > { %v2187_v2 = vadd.f32 %v2124_v24, %v1907_v46  ;;  %v2746_v0 = vmul.f32 %v2637_v55, %v2494_v38  ;;  %2835 = vmatpush.msrb.mxu1 %v2813_v40 }
 0x2ac   : > { %v2358_v27 = vpop.f32.mrf.mxu0 }
 0x2ad   : > { %v2419_v21 = vadd.f32 %v2356_v31, %v2187_v2  ;;  %v2781_v11 = vadd.f32 %v2780_v48, %v2746_v0 }
 0x2af   : > { %v2459_v43 = vadd.f32 %v4427_v6, %v2419_v21 }
 0x2b0   : > { %v1846_v30 = vpop.f32.mrf.mxu2 }
 0x2b1   : > { %v1908_v45 = vadd.f32 %v1846_v30, %v4690_v9  ;;  %v2126_v52 = vpop.f32.mrf.mxu3  ;;  %v2495_v33 = vmax.f32 %v2459_v43, 0.0  ;;  %v1703_v56 = vpop.f32.mrf.mxu1 }
 0x2b2   : > { %v1757_v22 = vadd.f32 %v1703_v56, %v4979_v28 }
 0x2b3   : > { %v2188_v41 = vadd.f32 %v2126_v52, %v1908_v45  ;;  %v2747_v1 = vmul.f32 %v2642_v59, %v2495_v33 }
 0x2b4   : > { %v2361_v58 = vpop.f32.mrf.mxu0 }
 0x2b5   : > { %v2420_v20 = vadd.f32 %v2358_v27, %v2188_v41  ;;  %v2782_v7 = vadd.f32 %v2781_v11, %v2747_v1  ;;  %v2662_v27 = vpop.permute.xlu1 %2661 }
 0x2b7   : > { %v2460_v8 = vadd.f32 %v4427_v6, %v2420_v20  ;;  %v2667_v20 = vpop.permute.xlu2 %2666 }
 0x2b8   : > { %v1849_v63 = vpop.f32.mrf.mxu2 }
 0x2b9   : > { %v2496_v29 = vmax.f32 %v2460_v8, 0.0  ;;  %v1909_v9 = vadd.f32 %v1849_v63, %v4703_v3  ;;  %v2129_v34 = vpop.f32.mrf.mxu3  ;;  %v1705_v48 = vpop.f32.mrf.mxu1 }
 0x2bb   : > { %v2748_v60 = vmul.f32 %v2647_v50, %v2496_v29  ;;  %v2189_v4 = vadd.f32 %v2129_v34, %v1909_v9  ;;  %v2812_v29 = vld [vmem:[%s4851_s4 + $0x20] sm:$0xff]  ;;  %v4980_v9 = vld [vmem:[#allocation21_spill] sm:$0xff] }
 0x2bc   : > { %v2363_v42 = vpop.f32.mrf.mxu0  ;;  %2836 = vmatpush.msrb.mxu1 %v2812_v29  ;;  %v1758_v34 = vadd.f32 %v1705_v48, %v4980_v9  ;;  %v4984_v29 = vld [vmem:[#allocation24_spill] sm:$0xff] }
 0x2bd   : > { %v2783_v57 = vadd.f32 %v2782_v7, %v2748_v60  ;;  %v2421_v53 = vadd.f32 %v2361_v58, %v2189_v4  ;;  %v2677_v48 = vpop.permute.xlu1 %2676 }
 0x2bf   : > { %v2461_v62 = vadd.f32 %v4427_v6, %v2421_v53  ;;  %v2672_v53 = vpop.permute.xlu0 %2671 }
 0x2c0   : > { %v1851_v18 = vpop.f32.mrf.mxu2 }
 0x2c1   : > { %v2497_v54 = vmax.f32 %v2461_v62, 0.0  ;;  %v1910_v39 = vadd.f32 %v1851_v18, %v4713_v35  ;;  %v2131_v49 = vpop.f32.mrf.mxu3 }
 0x2c3   : > { %v2749_v47 = vmul.f32 %v2652_v26, %v2497_v54  ;;  %v2190_v14 = vadd.f32 %v2131_v49, %v1910_v39  ;;  %v4981_v26 = vld [vmem:[#allocation32_spill] sm:$0xff] }
 0x2c4   : > { %v2366_v3 = vpop.f32.mrf.mxu0 }
 0x2c5   : > { %v2784_v25 = vadd.f32 %v2783_v57, %v2749_v47  ;;  %v2422_v37 = vadd.f32 %v2363_v42, %v2190_v14 }
 0x2c7   : > { %v2462_v51 = vadd.f32 %v4427_v6, %v2422_v37 }
 0x2c8   : > { %v1854_v31 = vpop.f32.mrf.mxu2 }
 0x2c9   : > { %v2498_v36 = vmax.f32 %v2462_v51, 0.0  ;;  %v1911_v17 = vadd.f32 %v1854_v31, %v4719_v15  ;;  %v2134_v19 = vpop.f32.mrf.mxu3  ;;  %v1708_v15 = vpop.f32.mrf.mxu1 }
 0x2ca   : > { %v1759_v47 = vadd.f32 %v1708_v15, %v4981_v26 }
 0x2cb   : > { %v2750_v55 = vmul.f32 %v2657_v44, %v2498_v36  ;;  %v2191_v46 = vadd.f32 %v2134_v19, %v1911_v17 }
 0x2cc   : > { %v2368_v38 = vpop.f32.mrf.mxu0 }
 0x2cd   : > { %v2785_v24 = vadd.f32 %v2784_v25, %v2750_v55  ;;  %v2423_v35 = vadd.f32 %v2366_v3, %v2191_v46  ;;  %v2811_v55 = vld [vmem:[%s4851_s4 + $0x18] sm:$0xff] }
 0x2ce   : > { %2837 = vmatpush.msrb.mxu1 %v2811_v55  ;;  %v4982_v46 = vld [vmem:[#allocation34_spill] sm:$0xff] }
 0x2cf   : > { %v2463_v2 = vadd.f32 %v4427_v6, %v2423_v35 }
 0x2d0   : > { %v1856_v0 = vpop.f32.mrf.mxu2 }
 0x2d1   : > { %v2499_v32 = vmax.f32 %v2463_v2, 0.0  ;;  %v1912_v21 = vadd.f32 %v1856_v0, %v1756_v5  ;;  %v2136_v11 = vpop.f32.mrf.mxu3  ;;  %v1710_v23 = vpop.f32.mrf.mxu1 }
 0x2d3   : > { %v2751_v43 = vmul.f32 %v2662_v27, %v2499_v32  ;;  %v2192_v30 = vadd.f32 %v2136_v11, %v1912_v21  ;;  %v2682_v21 = vpop.permute.xlu2 %2681 }
 0x2d4   : > { %v2371_v52 = vpop.f32.mrf.mxu0 }
 0x2d5   : > { %v2786_v59 = vadd.f32 %v2785_v24, %v2751_v43  ;;  %v2424_v45 = vadd.f32 %v2368_v38, %v2192_v30  ;;  %v1760_v24 = vadd.f32 %v1710_v23, %v4982_v46 }
 0x2d7   : > { %v2464_v33 = vadd.f32 %v4427_v6, %v2424_v45 }
 0x2d8   : > { %v1859_v56 = vpop.f32.mrf.mxu2 }
 0x2d9   : > { %v2500_v41 = vmax.f32 %v2464_v33, 0.0  ;;  %v1913_v1 = vadd.f32 %v1859_v56, %v1757_v22  ;;  %v2139_v28 = vpop.f32.mrf.mxu3  ;;  %v1713_v49 = vpop.f32.mrf.mxu1 }
 0x2db   : > { %v2752_v7 = vmul.f32 %v2667_v20, %v2500_v41  ;;  %v2193_v58 = vadd.f32 %v2139_v28, %v1913_v1  ;;  %v2687_v28 = vpop.permute.xlu0 %2686 }
 0x2dc   : > { %v2373_v63 = vpop.f32.mrf.mxu0 }
 0x2dd   : > { %v2787_v8 = vadd.f32 %v2786_v59, %v2752_v7  ;;  %v2425_v5 = vadd.f32 %v2371_v52, %v2193_v58  ;;  %v4983_v59 = vld [vmem:[#allocation25_spill] sm:$0xff] }
 0x2de   : > { %v1761_v45 = vadd.f32 %v1713_v49, %v4983_v59  ;;  %v4985_v49 = vld [vmem:[#allocation36_spill] sm:$0xff] }
 0x2df   : > { %v2465_v50 = vadd.f32 %v4427_v6, %v2425_v5 }
 0x2e0   : > { %v1861_v60 = vpop.f32.mrf.mxu2 }
 0x2e1   : > { %v2501_v4 = vmax.f32 %v2465_v50, 0.0  ;;  %v1914_v22 = vadd.f32 %v1861_v60, %v1758_v34  ;;  %v2141_v57 = vpop.f32.mrf.mxu3  ;;  %v1715_v38 = vpop.f32.mrf.mxu1 }
 0x2e2   : > { %v1762_v9 = vadd.f32 %v1715_v38, %v4984_v29 }
 0x2e3   : > { %v2753_v42 = vmul.f32 %v2672_v53, %v2501_v4  ;;  %v2194_v62 = vadd.f32 %v2141_v57, %v1914_v22  ;;  %v2692_v57 = vpop.permute.xlu1 %2691 }
 0x2e4   : > { %v2376_v39 = vpop.f32.mrf.mxu0 }
 0x2e5   : > { %v2788_v18 = vadd.f32 %v2787_v8, %v2753_v42  ;;  %v2426_v54 = vadd.f32 %v2373_v63, %v2194_v62  ;;  %v2810_v63 = vld [vmem:[%s4851_s4 + $0x10] sm:$0xff] }
 0x2e6   : > { %2838 = vmatpush.msrb.mxu1 %v2810_v63 }
 0x2e7   : > { %v2466_v14 = vadd.f32 %v4427_v6, %v2426_v54 }
 0x2e8   : > { %v1864_v25 = vpop.f32.mrf.mxu2 }
 0x2e9   : > { %v2502_v37 = vmax.f32 %v2466_v14, 0.0  ;;  %v1915_v3 = vadd.f32 %v1864_v25, %v1759_v47  ;;  %v2144_v51 = vpop.f32.mrf.mxu3  ;;  %v1718_v20 = vpop.f32.mrf.mxu1 }
 0x2ea   : > { %v1763_v26 = vadd.f32 %v1718_v20, %v4985_v49 }
 0x2eb   : > { %v2754_v31 = vmul.f32 %v2677_v48, %v2502_v37  ;;  %v2195_v36 = vadd.f32 %v2144_v51, %v1915_v3  ;;  %v2697_v51 = vpop.permute.xlu2 %2696 }
 0x2ec   : > { %v2378_v44 = vpop.f32.mrf.mxu0 }
 0x2ed   : > { %v2789_v17 = vadd.f32 %v2788_v18, %v2754_v31  ;;  %v2427_v19 = vadd.f32 %v2376_v39, %v2195_v36 }
 0x2ef   : > { %v2467_v35 = vadd.f32 %v4427_v6, %v2427_v19 }
 0x2f0   : > { %v1866_v40 = vpop.f32.mrf.mxu2 }
 0x2f1   : > { %v2503_v2 = vmax.f32 %v2467_v35, 0.0  ;;  %v1916_v0 = vadd.f32 %v1866_v40, %v1760_v24  ;;  %v2146_v32 = vpop.f32.mrf.mxu3  ;;  %v1720_v62 = vpop.f32.mrf.mxu1 }
 0x2f2   : > { %v1764_v55 = vadd.f32 %v1720_v62, %v4330_v61 }
 0x2f3   : > { %v2755_v11 = vmul.f32 %v2682_v21, %v2503_v2  ;;  %v2196_v27 = vadd.f32 %v2146_v32, %v1916_v0  ;;  %v2702_v2 = vpop.permute.xlu0 %2701  ;;  %v2712_v29 = vpop.permute.xlu2 %2711 }
 0x2f4   : > { %v2381_v30 = vpop.f32.mrf.mxu0 }
 0x2f5   : > { %v2790_v15 = vadd.f32 %v2789_v17, %v2755_v11  ;;  %v2428_v43 = vadd.f32 %v2378_v44, %v2196_v27  ;;  %v2809_v27 = vld [vmem:[%s4851_s4 + $0x8] sm:$0xff] }
 0x2f6   : > { %2839 = vmatpush.msrb.mxu1 %v2809_v27 }
 0x2f7   : > { %v2468_v52 = vadd.f32 %v4427_v6, %v2428_v43  ;;  %v4770_v6 = vld [vmem:[%s4849_s2] ss:$0 sm:$0xff] }
 0x2f8   : > { %v1869_v33 = vpop.f32.mrf.mxu2 }
 0x2f9   : > { %v2504_v56 = vmax.f32 %v2468_v52, 0.0  ;;  %v1917_v41 = vadd.f32 %v1869_v33, %v1761_v45  ;;  %v2149_v1 = vpop.f32.mrf.mxu3  ;;  %v1723_v44 = vpop.f32.mrf.mxu1 }
 0x2fa   : > { %v1765_v43 = vadd.f32 %v1723_v44, %v4347_v12 }
 0x2fb   : > { %v2756_v7 = vmul.f32 %v2687_v28, %v2504_v56  ;;  %v2197_v58 = vadd.f32 %v2149_v1, %v1917_v41  ;;  %v2707_v56 = vpop.permute.xlu1 %2706 }
 0x2fc   : > { %v2383_v5 = vpop.f32.mrf.mxu0 }
 0x2fd   : > { %v2791_v23 = vadd.f32 %v2790_v15, %v2756_v7  ;;  %v2429_v8 = vadd.f32 %v2381_v30, %v2197_v58 }
 0x2ff   : > { %v2469_v34 = vadd.f32 %v4770_v6, %v2429_v8 }
 0x300   : > { %v1871_v50 = vpop.f32.mrf.mxu2 }
 0x301   : > { %v2505_v60 = vmax.f32 %v2469_v34, 0.0  ;;  %v1918_v4 = vadd.f32 %v1871_v50, %v1762_v9  ;;  %v2151_v22 = vpop.f32.mrf.mxu3  ;;  %v1725_v30 = vpop.f32.mrf.mxu1 }
 0x302   : > { %v1766_v7 = vadd.f32 %v1725_v30, %v4364_v16 }
 0x303   : > { %v2757_v53 = vmul.f32 %v2692_v57, %v2505_v60  ;;  %v2198_v42 = vadd.f32 %v2151_v22, %v1918_v4  ;;  %v2808_v22 = vld [vmem:[%s4851_s4] sm:$0xff] }
 0x304   : > { %v2386_v39 = vpop.f32.mrf.mxu0  ;;  %2840 = vmatpush.msrb.mxu1 %v2808_v22 }
 0x305   : > { %v2792_v18 = vadd.f32 %v2791_v23, %v2757_v53  ;;  %v2430_v54 = vadd.f32 %v2383_v5, %v2198_v42 }
 0x307   : > { %v2470_v47 = vadd.f32 %v4770_v6, %v2430_v54  ;;  %v2717_v54 = vpop.permute.xlu0 %2716 }
 0x308   : > { %v1874_v14 = vpop.f32.mrf.mxu2 }
 0x309   : > { %v2506_v25 = vmax.f32 %v2470_v47, 0.0  ;;  %v1919_v37 = vadd.f32 %v1874_v14, %v1763_v26  ;;  %v2154_v3 = vpop.f32.mrf.mxu3  ;;  %v1728_v9 = vpop.f32.mrf.mxu1 }
 0x30a   : > { %v1767_v16 = vadd.f32 %v1728_v9, %v4384_v13 }
 0x30b   : > { %v2758_v48 = vmul.f32 %v2697_v51, %v2506_v25  ;;  %v2199_v31 = vadd.f32 %v2154_v3, %v1919_v37 }
 0x30c   : > { %v2388_v19 = vpop.f32.mrf.mxu0 }
 0x30d   : > { %v2793_v36 = vadd.f32 %v2792_v18, %v2758_v48  ;;  %v2431_v17 = vadd.f32 %v2386_v39, %v2199_v31  ;;  %v2722_v31 = vpop.permute.xlu1 %2721 }
 0x30f   : > { %v2471_v46 = vadd.f32 %v4770_v6, %v2431_v17 }
 0x310   : > { %v1876_v24 = vpop.f32.mrf.mxu2 }
 0x311   : > { %v2507_v35 = vmax.f32 %v2471_v46, 0.0  ;;  %v1920_v38 = vadd.f32 %v1876_v24, %v1764_v55  ;;  %v2156_v40 = vpop.f32.mrf.mxu3  ;;  %v1730_v47 = vpop.f32.mrf.mxu1 }
 0x312   : > { %v1768_v37 = vadd.f32 %v1730_v47, %v4401_v10 }
 0x313   : > { %v2759_v0 = vmul.f32 %v2702_v2, %v2507_v35  ;;  %v2200_v32 = vadd.f32 %v2156_v40, %v1920_v38  ;;  %v2727_v38 = vpop.permute.xlu2 %2726 }
 0x314   : > { %v2391_v15 = vpop.f32.mrf.mxu0 }
 0x315   : > { %v2794_v21 = vadd.f32 %v2793_v36, %v2759_v0  ;;  %v2432_v11 = vadd.f32 %v2388_v19, %v2200_v32 }
 0x317   : > { %v2472_v61 = vadd.f32 %v4770_v6, %v2432_v11 }
 0x318   : > { %v1879_v59 = vpop.f32.mrf.mxu2 }
 0x319   : > { %v2508_v45 = vmax.f32 %v2472_v61, 0.0  ;;  %v1921_v52 = vadd.f32 %v1879_v59, %v1765_v43  ;;  %v2159_v33 = vpop.f32.mrf.mxu3 }
 0x31b   : > { %v2760_v41 = vmul.f32 %v2707_v56, %v2508_v45  ;;  %v2201_v1 = vadd.f32 %v2159_v33, %v1921_v52 }
 0x31c   : > { %v2393_v23 = vpop.f32.mrf.mxu0 }
 0x31d   : > { %v2795_v28 = vadd.f32 %v2794_v21, %v2760_v41  ;;  %v2433_v20 = vadd.f32 %v2391_v15, %v2201_v1 }
 0x31f   : > { %v2473_v58 = vadd.f32 %v4770_v6, %v2433_v20 }
 0x320   : > { %v1881_v8 = vpop.f32.mrf.mxu2 }
 0x321   : > { %v2509_v5 = vmax.f32 %v2473_v58, 0.0  ;;  %v1922_v12 = vadd.f32 %v1881_v8, %v1766_v7  ;;  %v2161_v63 = vpop.f32.mrf.mxu3 }
 0x323   : > { %v2761_v34 = vmul.f32 %v2712_v29, %v2509_v5  ;;  %v2202_v50 = vadd.f32 %v2161_v63, %v1922_v12 }
 0x324   : > { %v2396_v39 = vpop.f32.mrf.mxu0 }
 0x325   : > { %v2796_v60 = vadd.f32 %v2795_v28, %v2761_v34  ;;  %v2434_v4 = vadd.f32 %v2393_v23, %v2202_v50 }
 0x327   : > { %v2474_v57 = vadd.f32 %v4770_v6, %v2434_v4 }
 0x328   : > { %v1884_v53 = vpop.f32.mrf.mxu2 }
 0x329   : > { %v2510_v42 = vmax.f32 %v2474_v57, 0.0  ;;  %v1923_v62 = vadd.f32 %v1884_v53, %v1767_v16  ;;  %v2164_v18 = vpop.f32.mrf.mxu3 }
 0x32b   : > { %v2762_v49 = vmul.f32 %v2717_v54, %v2510_v42  ;;  %v2203_v26 = vadd.f32 %v2164_v18, %v1923_v62 }
 0x32c   : > { %v2398_v44 = vpop.f32.mrf.mxu0 }
 0x32d   : > { %v2797_v14 = vadd.f32 %v2796_v60, %v2762_v49  ;;  %v2435_v25 = vadd.f32 %v2396_v39, %v2203_v26 }
 0x32f   : > { %v2475_v3 = vadd.f32 %v4770_v6, %v2435_v25 }
 0x330   : > { %v1886_v51 = vpop.f32.mrf.mxu2 }
 0x331   : > { %v2511_v48 = vmax.f32 %v2475_v3, 0.0  ;;  %v1924_v13 = vadd.f32 %v1886_v51, %v1768_v37  ;;  %v2166_v36 = vpop.f32.mrf.mxu3 }
 0x333   : > { %v2763_v17 = vmul.f32 %v2722_v31, %v2511_v48  ;;  %v2204_v19 = vadd.f32 %v2166_v36, %v1924_v13 }
 0x335   : > { %v2798_v55 = vadd.f32 %v2797_v14, %v2763_v17  ;;  %v2436_v46 = vadd.f32 %v2398_v44, %v2204_v19 }
 0x337   : > { %v2476_v24 = vadd.f32 %v4770_v6, %v2436_v46 }
 0x339   : > { %v2512_v35 = vmax.f32 %v2476_v24, 0.0 }
 0x33b   : > { %v2764_v40 = vmul.f32 %v2727_v38, %v2512_v35 }
 0x33d   : > { %v2799_v10 = vadd.f32 %v2798_v55, %v2764_v40 }
 0x33f   : > { %v2800_v2 = vrot.slane %v2799_v10, 4 }
 0x341   : > { %v2801_v0 = vadd.f32 %v2800_v2, %v2799_v10 }
 0x343   : > { %v2802_v32 = vrot.slane %v2801_v0, 2 }
 0x345   : > { %v2803_v21 = vadd.f32 %v2802_v32, %v2801_v0 }
 0x347   : > { %v2804_v11 = vrot.slane %v2803_v21, 1 }
 0x349   : > { %v2805_v27 = vadd.f32 %v2804_v11, %v2803_v21 }
 0x34b   : > { %v2806_v15 = vmul.f32 0.00390625, %v2805_v27 }
 0x34d   : > { %2841 = vmatmul.f32.vlgmr.msrb.gmra.mxu1 %v2806_v15  ;;  %2807 = vst [vmem:[%s274_s15] sm:$0x1] %v2806_v15 }
 0x34e   : > { %3334 = shalt.err (!%p3331_p3)
}
 0x34f   : > { %3240 = dma.vmem_to_hbm [thread:$0]  (%p3482_p5), %s2862_s16, 16, %s2864_s17, %s2847_s18   ;;  %v2824_v6 = vld [vmem:[%s4852_s5] sm:$0x1] }
 0x350   : > { %s2872_s15 = scalar_lea.hbm %s4854_s7, %s3465_s28  ;;  %s280_s19 = scalar_lea.vmem [#allocation4], %s4793_s29 }
 0x351   : > { %s2874_s20 = sshll.u32 %s280_s19, 4  ;;  %s2876_s22 = sshll.u32 %s2872_s15, 4  ;;  %s2875_s20 = int_to_ptr.vmem [resolvable:$true] %s2874_s20  ;;  %s2877_s22 = int_to_ptr.hbm [resolvable:$true] %s2876_s22 }
 0x352   : > { %s2851_s23 = scalar_lea.sflag [#allocation5], %s4793_s29  ;;  %s3349_s9 = sshra.s32 %s2877_s22, 4  ;;  %s3350_s9 = int_to_ptr.hbm [resolvable:$true] %s3349_s9 }
 0x353   : > { %s3351_s16 = scalar_lea.hbm %s3350_s9, 1  ;;  %s3355_s18 = scalar_lea.hbm %s4854_s7, 2 }
 0x354   : > { %p3352_p4 = scmp.ne.s32.totalorder %s3350_s9, %s3351_s16  ;;  %p3356_p9 = scmp.lt.s32.totalorder %s3350_s9, %s4854_s7 }
 0x355   : > { %p3357_p10 = scmp.lt.s32.totalorder %s3355_s18, %s3351_s16 }
 0x356   : > { %p3353_p7 = pnand %p3352_p4, %p3482_p5 }
 0x357   : > { %p3358_p11 = por %p3357_p10, %p3356_p9 }
 0x358   : > { %p3354_p8 = pneg %p3353_p7 }
 0x35a   : > { %p3359_p12 = pnand %p3358_p11, %p3354_p8 }
 0x3ca   : > { %v2842_v43 = vpop.f32.mrf.mxu1 }
 0x3cb   : > { %v2843_v61 = vadd.f32 %v2842_v43, %v2824_v6 }
 0x3cd   : > { %2845 = vst [vmem:[%s280_s19] sm:$0x1] %v2843_v61 }
 0x3ce   : > { %3362 = shalt.err (!%p3359_p12)
}
 0x3cf   : > { %3241 = dma.vmem_to_hbm [thread:$0]  (%p3482_p5), %s2875_s20, 16, %s2877_s22, %s2851_s23  }
 0x3d0 PF: > { %p3251_p13 = scmp.ge.s32.totalorder %s3401_s27, 2  ;;  %s2888_s29 = sand.u32 1, %s3389_s24  }
 0x3d1   : > { %s2889_s15 = scalar_lea.sflag [#allocation3], %s2888_s29 }
 0x3d2   : > { %p3245_p0 = pnand %p3251_p13, %p3486_p6 }
 0x3d4   : > { %p3246_p1 = pneg %p3245_p0 }
 0x3d6   : > { %3380 = dma.done.wait (%p3246_p1), %s2889_s15, 16  }
 0x3d7   : > { %3382 = vsyncadd (%p3246_p1), %s2889_s15, 4294967280  ;;  %s2898_s8 = scalar_lea.sflag [#allocation5], %s2888_s29 }
 0x3d8   : > { %3384 = dma.done.wait (%p3246_p1), %s2898_s8, 16  }
 0x3d9   : > { %3386 = vsyncadd (%p3246_p1), %s2898_s8, 4294967280  ;;  %p21_p5 = scmp.ge.s32.totalorder %s3469_s30, 4   ;;  %s4986_s24 = smov %s3393_s25 }
 0x3da   : > { %s4987_s25 = smov %s3397_s26  ;;  %s4988_s26 = smov %s3480_s10 }
 0x3db   : > { %s4989_s27 = smov %s3469_s30  ;;  %23 = sbr.rel (!%p21_p5) target bundleno = 5 (0x5), region = 104 }
 0x3e0   :  { %2903 = vsyncpa [#allocation3], 1 }
 0x3e1   :  { %2905 = vsyncpa [#allocation3 + $0x1], 1 }
 0x3e2   :  { %2906 = vsyncpa [#allocation5], 1 }
 0x3e3   :  { %2908 = vsyncpa [#allocation5 + $0x1], 1 }

</bundles_post_ra>
